<compile_context>
chip_gen: v7x
topology: tpu7x:2x2x1
jax: 0.10.0
libtpu: 0.0.40
codegen_flags: <defaults>
</compile_context>

<pallas_src>
import functools

import jax
import jax.numpy as jnp
from jax import lax
from jax.experimental import pallas as pl
from jax.experimental.pallas import tpu as pltpu


# ----------------------------------------------------------------------------
# Pallas kernel: streamed BiLSTM recurrence + pooling + FC + sigmoid.
# Grid axis 0 walks T tiles; LSTM state and pooling accumulators live in VMEM
# scratch and persist across grid iterations.
# ----------------------------------------------------------------------------
def bilstm_kernel(x_f_ref, x_b_ref,                 # (1, T_TILE*B, D) fwd / bwd tile streams
                  wih_f_ref, whh_f_ref, b_f_ref,    # fwd dir: (D,4H), (H,4H), (1,4H)
                  wih_b_ref, whh_b_ref, b_b_ref,    # bwd dir: (D,4H), (H,4H), (1,4H)
                  fc_w_ref, fc_b_ref,               # (4H, O), (1, O)
                  out_ref,                          # (B, O)
                  h_f_ref, c_f_ref, h_b_ref, c_b_ref,   # state scratch, (B, H) each
                  s_f_ref, m_f_ref, s_b_ref, m_b_ref,   # pooling scratch, (B, H) each
                  *, hidden_size, batch, t_tile, seq_len):
    H = hidden_size
    B = batch
    t = pl.program_id(0)

    # ---- init state at first tile ------------------------------------------
    @pl.when(t == 0)
    def _init():
        zeros = jnp.zeros((B, H), jnp.float32)
        neg = jnp.full((B, H), -jnp.inf, jnp.float32)
        h_f_ref[...] = zeros
        c_f_ref[...] = zeros
        h_b_ref[...] = zeros
        c_b_ref[...] = zeros
        s_f_ref[...] = zeros
        s_b_ref[...] = zeros
        m_f_ref[...] = neg
        m_b_ref[...] = neg

    # ---- hoisted input projection for this tile (big MXU matmuls, bias folded)
    x_f = x_f_ref[0]                                   # (T_TILE*B, D)
    x_b = x_b_ref[0]                                   # (T_TILE*B, D), tile (N-1-t)
    xg_f = (jnp.dot(x_f, wih_f_ref[...], preferred_element_type=jnp.float32)
            + b_f_ref[...])                            # (T_TILE*B, 4H)
    xg_b = (jnp.dot(x_b, wih_b_ref[...], preferred_element_type=jnp.float32)
            + b_b_ref[...])                            # (T_TILE*B, 4H)

    # ---- load carried state ---------------------------------------------------
    h_f = h_f_ref[...]
    c_f = c_f_ref[...]
    h_b = h_b_ref[...]
    c_b = c_b_ref[...]
    s_f = s_f_ref[...]
    m_f = m_f_ref[...]
    s_b = s_b_ref[...]
    m_b = m_b_ref[...]

    whh_f = whh_f_ref[...]
    whh_b = whh_b_ref[...]

    # ---- fused, fully-unrolled recurrence over this tile's timesteps ---------
    # Gate column layout (permuted at prep time): [i, f, o | g]
    for j in range(t_tile):
        gx_f = xg_f[j * B:(j + 1) * B, :]                              # fwd: step j
        gx_b = xg_b[(t_tile - 1 - j) * B:(t_tile - j) * B, :]          # bwd: reversed

        g_f = gx_f + jnp.dot(h_f, whh_f, preferred_element_type=jnp.float32)
        g_b = gx_b + jnp.dot(h_b, whh_b, preferred_element_type=jnp.float32)

        sig_f = jax.nn.sigmoid(g_f[:, :3 * H])          # (B, 3H): i, f, o
        tnh_f = jnp.tanh(g_f[:, 3 * H:])                # (B, H):  g
        sig_b = jax.nn.sigmoid(g_b[:, :3 * H])
        tnh_b = jnp.tanh(g_b[:, 3 * H:])

        c_f = sig_f[:, H:2 * H] * c_f + sig_f[:, :H] * tnh_f
        h_f = sig_f[:, 2 * H:] * jnp.tanh(c_f)
        c_b = sig_b[:, H:2 * H] * c_b + sig_b[:, :H] * tnh_b
        h_b = sig_b[:, 2 * H:] * jnp.tanh(c_b)

        # avg / max pooling over time is separable per direction: accumulate
        # a running sum and running max instead of storing every h_t.
        s_f = s_f + h_f
        m_f = jnp.maximum(m_f, h_f)
        s_b = s_b + h_b
        m_b = jnp.maximum(m_b, h_b)

    # ---- store carried state ----------------------------------------------
    h_f_ref[...] = h_f
    c_f_ref[...] = c_f
    h_b_ref[...] = h_b
    c_b_ref[...] = c_b
    s_f_ref[...] = s_f
    m_f_ref[...] = m_f
    s_b_ref[...] = s_b
    m_b_ref[...] = m_b

    # ---- finalize: pooling concat + FC + sigmoid on the last tile ----------
    @pl.when(t == pl.num_programs(0) - 1)
    def _finalize():
        inv_t = 1.0 / float(seq_len)
        avg_pool = jnp.concatenate([s_f, s_b], axis=-1) * inv_t        # (B, 2H)
        max_pool = jnp.concatenate([m_f, m_b], axis=-1)                # (B, 2H)
        conc = jnp.concatenate([avg_pool, max_pool], axis=-1)          # (B, 4H)
        logits = (jnp.dot(conc, fc_w_ref[...], preferred_element_type=jnp.float32)
                  + fc_b_ref[...])                                     # (B, O)
        out_ref[...] = jax.nn.sigmoid(logits)


def _pick_t_tile(T, max_tile=8):
    """Largest divisor of T that is <= max_tile (falls back to T)."""
    for cand in range(min(T, max_tile), 0, -1):
        if T % cand == 0:
            return cand
    return T


def bilstm_forward(x, params, hidden_size, t_tile=None):
    """x: (B, T, D) batch-first (PyTorch convention). params: see prep_params."""
    B, T, D = x.shape
    H = hidden_size
    O = params["fc_b"].shape[-1]
    if t_tile is None:
        t_tile = _pick_t_tile(T)
    assert T % t_tile == 0, (T, t_tile)
    num_tiles = T // t_tile

    # Time-major, then group (t_tile, B) rows per tile: row j*B+b of tile n is
    # timestep n*t_tile + j, batch b.
    x_tiles = jnp.transpose(x, (1, 0, 2)).reshape(num_tiles, t_tile * B, D)

    kernel = functools.partial(bilstm_kernel, hidden_size=H, batch=B,
                               t_tile=t_tile, seq_len=T)

    in_specs = [
        # forward tile stream
        pl.BlockSpec((1, t_tile * B, D), lambda t: (t, 0, 0)),
        # backward tile stream (same array, tiles walked from the end)
        pl.BlockSpec((1, t_tile * B, D), lambda t: (num_tiles - 1 - t, 0, 0)),
        # weights / biases: resident, fetched once (constant block index)
        pl.BlockSpec((D, 4 * H), lambda t: (0, 0)),
        pl.BlockSpec((H, 4 * H), lambda t: (0, 0)),
        pl.BlockSpec((1, 4 * H), lambda t: (0, 0)),
        pl.BlockSpec((D, 4 * H), lambda t: (0, 0)),
        pl.BlockSpec((H, 4 * H), lambda t: (0, 0)),
        pl.BlockSpec((1, 4 * H), lambda t: (0, 0)),
        pl.BlockSpec((4 * H, O), lambda t: (0, 0)),
        pl.BlockSpec((1, O), lambda t: (0, 0)),
    ]

    return pl.pallas_call(
        kernel,
        out_shape=jax.ShapeDtypeStruct((B, O), jnp.float32),
        grid=(num_tiles,),
        in_specs=in_specs,
        out_specs=pl.BlockSpec((B, O), lambda t: (0, 0)),
        scratch_shapes=[pltpu.VMEM((B, H), jnp.float32) for _ in range(8)],
        compiler_params=pltpu.CompilerParams(
            dimension_semantics=("arbitrary",),
            vmem_limit_bytes=32 * 1024 * 1024),
    )(x_tiles, x_tiles,
      params["wih_f"], params["whh_f"], params["b_f"],
      params["wih_b"], params["whh_b"], params["b_b"],
      params["fc_w"], params["fc_b"])


# ----------------------------------------------------------------------------
# Parameter init in PyTorch layout + prep into the kernel's layout.
# ----------------------------------------------------------------------------
def init_params_torch(key, input_size, hidden_size, output_size):
    """PyTorch shapes & gate order [i, f, g, o]."""
    H = hidden_size
    bound = 1.0 / (H ** 0.5)
    ks = jax.random.split(key, 10)

    def u(k, shape, b):
        return jax.random.uniform(k, shape, jnp.float32, -b, b)

    p = {}
    for idx, d in enumerate(["f", "b"]):
        base = idx * 4
        p[f"w_ih_{d}"] = u(ks[base + 0], (4 * H, input_size), bound)
        p[f"w_hh_{d}"] = u(ks[base + 1], (4 * H, H), bound)
        p[f"b_ih_{d}"] = u(ks[base + 2], (4 * H,), bound)
        p[f"b_hh_{d}"] = u(ks[base + 3], (4 * H,), bound)
    fc_bound = 1.0 / ((4 * H) ** 0.5)
    p["fc_w"] = u(ks[8], (output_size, 4 * H), fc_bound)
    p["fc_b"] = u(ks[9], (output_size,), fc_bound)
    return p


def _reorder_ifgo_to_ifog(w, H):
    """Permute PyTorch gate blocks [i,f,g,o] -> kernel order [i,f,o,g] (axis 0)."""
    i, f, g, o = w[0:H], w[H:2 * H], w[2 * H:3 * H], w[3 * H:4 * H]
    return jnp.concatenate([i, f, o, g], axis=0)


def prep_params(tp, hidden_size):
    """PyTorch-layout params -> kernel layout (transposed, gate-permuted, bias fused)."""
    H = hidden_size
    out = {}
    for d in ("f", "b"):
        w_ih = _reorder_ifgo_to_ifog(tp[f"w_ih_{d}"], H)            # (4H, D)
        w_hh = _reorder_ifgo_to_ifog(tp[f"w_hh_{d}"], H)            # (4H, H)
        bias = _reorder_ifgo_to_ifog(tp[f"b_ih_{d}"] + tp[f"b_hh_{d}"], H)
        out[f"wih_{d}"] = jnp.transpose(w_ih)                       # (D, 4H)
        out[f"whh_{d}"] = jnp.transpose(w_hh)                       # (H, 4H)
        out[f"b_{d}"] = bias[None, :]                               # (1, 4H)
    out["fc_w"] = jnp.transpose(tp["fc_w"])                         # (4H, O)
    out["fc_b"] = tp["fc_b"][None, :]                               # (1, O)
    return out


# ----------------------------------------------------------------------------
# Pure-JAX reference (PyTorch LSTM semantics, gate order i,f,g,o).
# ----------------------------------------------------------------------------
def reference_forward(x, tp, hidden_size):
    B, T, D = x.shape
    H = hidden_size

    def run_dir(xs, w_ih, w_hh, b_ih, b_hh):
        wih_t, whh_t = w_ih.T, w_hh.T
        bias = (b_ih + b_hh)[None, :]

        def step(carry, x_t):
            h, c = carry
            g = x_t @ wih_t + h @ whh_t + bias
            i = jax.nn.sigmoid(g[:, :H])
            f = jax.nn.sigmoid(g[:, H:2 * H])
            gg = jnp.tanh(g[:, 2 * H:3 * H])
            o = jax.nn.sigmoid(g[:, 3 * H:])
            c = f * c + i * gg
            h = o * jnp.tanh(c)
            return (h, c), h

        init = (jnp.zeros((B, H)), jnp.zeros((B, H)))
        _, hs = lax.scan(step, init, xs)
        return hs                                                   # (T, B, H)

    x_tm = jnp.transpose(x, (1, 0, 2))
    h_f = run_dir(x_tm, tp["w_ih_f"], tp["w_hh_f"], tp["b_ih_f"], tp["b_hh_f"])
    h_b = run_dir(x_tm[::-1], tp["w_ih_b"], tp["w_hh_b"], tp["b_ih_b"], tp["b_hh_b"])[::-1]
    h_lstm = jnp.concatenate([h_f, h_b], axis=-1)                   # (T, B, 2H)
    avg_p = jnp.mean(h_lstm, axis=0)
    max_p = jnp.max(h_lstm, axis=0)
    conc = jnp.concatenate([avg_p, max_p], axis=-1)                 # (B, 4H)
    return jax.nn.sigmoid(conc @ tp["fc_w"].T + tp["fc_b"][None, :])


if __name__ == "__main__":
    B, T = 2, 16
    input_size, hidden_size, output_size = 16, 32, 4

    key = jax.random.PRNGKey(0)
    kx, kp = jax.random.split(key)
    x = jax.random.normal(kx, (B, T, input_size), jnp.float32)

    torch_params = init_params_torch(kp, input_size, hidden_size, output_size)
    params = prep_params(torch_params, hidden_size)

    out = bilstm_forward(x, params, hidden_size)
    out = jax.block_until_ready(out)

    ref = reference_forward(x, torch_params, hidden_size)
    assert out.shape == (B, output_size)
    assert jnp.allclose(out, ref, atol=1e-5, rtol=1e-5), (out, ref)

    print("KERNEL_OK")
</pallas_src>

<mosaic_0001>
module attributes {stable_mosaic.version = 11 : i64} {
  func.func @bilstm_kernel(%arg0: i32, %arg1: memref<1x16x16xf32, #tpu.memory_space<vmem>>, %arg2: memref<1x16x16xf32, #tpu.memory_space<vmem>>, %arg3: memref<16x128xf32, #tpu.memory_space<vmem>>, %arg4: memref<32x128xf32, #tpu.memory_space<vmem>>, %arg5: memref<1x128xf32, #tpu.memory_space<vmem>>, %arg6: memref<16x128xf32, #tpu.memory_space<vmem>>, %arg7: memref<32x128xf32, #tpu.memory_space<vmem>>, %arg8: memref<1x128xf32, #tpu.memory_space<vmem>>, %arg9: memref<128x4xf32, #tpu.memory_space<vmem>>, %arg10: memref<1x4xf32, #tpu.memory_space<vmem>>, %arg11: memref<2x4xf32, #tpu.memory_space<vmem>>, %arg12: memref<2x32xf32, #tpu.memory_space<vmem>>, %arg13: memref<2x32xf32, #tpu.memory_space<vmem>>, %arg14: memref<2x32xf32, #tpu.memory_space<vmem>>, %arg15: memref<2x32xf32, #tpu.memory_space<vmem>>, %arg16: memref<2x32xf32, #tpu.memory_space<vmem>>, %arg17: memref<2x32xf32, #tpu.memory_space<vmem>>, %arg18: memref<2x32xf32, #tpu.memory_space<vmem>>, %arg19: memref<2x32xf32, #tpu.memory_space<vmem>>) attributes {dimension_semantics = [#tpu.dimension_semantics<arbitrary>], iteration_bounds = array<i64: 2>, scalar_prefetch = 0 : i64, scratch_operands = 8 : i64, tpu.core_type = #tpu.core_type<tc>, window_params = [{transform_indices = @transform_0, window_bounds = array<i64: 1, 16, 16>}, {transform_indices = @transform_1, window_bounds = array<i64: 1, 16, 16>}, {pipeline_mode = #tpu.pipeline_mode<synchronous>, transform_indices = @transform_2, window_bounds = array<i64: 16, 128>}, {pipeline_mode = #tpu.pipeline_mode<synchronous>, transform_indices = @transform_3, window_bounds = array<i64: 32, 128>}, {pipeline_mode = #tpu.pipeline_mode<synchronous>, transform_indices = @transform_4, window_bounds = array<i64: 1, 128>}, {pipeline_mode = #tpu.pipeline_mode<synchronous>, transform_indices = @transform_5, window_bounds = array<i64: 16, 128>}, {pipeline_mode = #tpu.pipeline_mode<synchronous>, transform_indices = @transform_6, window_bounds = array<i64: 32, 128>}, {pipeline_mode = #tpu.pipeline_mode<synchronous>, transform_indices = @transform_7, window_bounds = array<i64: 1, 128>}, {pipeline_mode = #tpu.pipeline_mode<synchronous>, transform_indices = @transform_8, window_bounds = array<i64: 128, 4>}, {pipeline_mode = #tpu.pipeline_mode<synchronous>, transform_indices = @transform_9, window_bounds = array<i64: 1, 4>}, {pipeline_mode = #tpu.pipeline_mode<synchronous>, transform_indices = @transform_10, window_bounds = array<i64: 2, 4>}]} {
    %c0_i32 = arith.constant 0 : i32
    %0 = arith.cmpi eq, %arg0, %c0_i32 : i32
    %1 = arith.extui %0 : i1 to i32
    %c0_i32_0 = arith.constant 0 : i32
    %2 = arith.cmpi ne, %1, %c0_i32_0 : i32
    scf.if %2 {
      %cst_84 = arith.constant 0.000000e+00 : f32
      %374 = vector.broadcast %cst_84 : f32 to vector<2x32xf32>
      %cst_85 = arith.constant 0xFF800000 : f32
      %375 = vector.broadcast %cst_85 : f32 to vector<2x32xf32>
      %c0_86 = arith.constant 0 : index
      %c0_87 = arith.constant 0 : index
      %376 = vector.load %arg12[%c0_86, %c0_87] : memref<2x32xf32, #tpu.memory_space<vmem>>, vector<2x32xf32>
      tpu.vector_store %arg12[%c0_86, %c0_87], %374 {strides = array<i32>} : memref<2x32xf32, #tpu.memory_space<vmem>>, vector<2x32xf32>,
      %c0_88 = arith.constant 0 : index
      %c0_89 = arith.constant 0 : index
      %377 = vector.load %arg13[%c0_88, %c0_89] : memref<2x32xf32, #tpu.memory_space<vmem>>, vector<2x32xf32>
      tpu.vector_store %arg13[%c0_88, %c0_89], %374 {strides = array<i32>} : memref<2x32xf32, #tpu.memory_space<vmem>>, vector<2x32xf32>,
      %c0_90 = arith.constant 0 : index
      %c0_91 = arith.constant 0 : index
      %378 = vector.load %arg14[%c0_90, %c0_91] : memref<2x32xf32, #tpu.memory_space<vmem>>, vector<2x32xf32>
      tpu.vector_store %arg14[%c0_90, %c0_91], %374 {strides = array<i32>} : memref<2x32xf32, #tpu.memory_space<vmem>>, vector<2x32xf32>,
      %c0_92 = arith.constant 0 : index
      %c0_93 = arith.constant 0 : index
      %379 = vector.load %arg15[%c0_92, %c0_93] : memref<2x32xf32, #tpu.memory_space<vmem>>, vector<2x32xf32>
      tpu.vector_store %arg15[%c0_92, %c0_93], %374 {strides = array<i32>} : memref<2x32xf32, #tpu.memory_space<vmem>>, vector<2x32xf32>,
      %c0_94 = arith.constant 0 : index
      %c0_95 = arith.constant 0 : index
      %380 = vector.load %arg16[%c0_94, %c0_95] : memref<2x32xf32, #tpu.memory_space<vmem>>, vector<2x32xf32>
      tpu.vector_store %arg16[%c0_94, %c0_95], %374 {strides = array<i32>} : memref<2x32xf32, #tpu.memory_space<vmem>>, vector<2x32xf32>,
      %c0_96 = arith.constant 0 : index
      %c0_97 = arith.constant 0 : index
      %381 = vector.load %arg18[%c0_96, %c0_97] : memref<2x32xf32, #tpu.memory_space<vmem>>, vector<2x32xf32>
      tpu.vector_store %arg18[%c0_96, %c0_97], %374 {strides = array<i32>} : memref<2x32xf32, #tpu.memory_space<vmem>>, vector<2x32xf32>,
      %c0_98 = arith.constant 0 : index
      %c0_99 = arith.constant 0 : index
      %382 = vector.load %arg17[%c0_98, %c0_99] : memref<2x32xf32, #tpu.memory_space<vmem>>, vector<2x32xf32>
      tpu.vector_store %arg17[%c0_98, %c0_99], %375 {strides = array<i32>} : memref<2x32xf32, #tpu.memory_space<vmem>>, vector<2x32xf32>,
      %c0_100 = arith.constant 0 : index
      %c0_101 = arith.constant 0 : index
      %383 = vector.load %arg19[%c0_100, %c0_101] : memref<2x32xf32, #tpu.memory_space<vmem>>, vector<2x32xf32>
      tpu.vector_store %arg19[%c0_100, %c0_101], %375 {strides = array<i32>} : memref<2x32xf32, #tpu.memory_space<vmem>>, vector<2x32xf32>,
    } else {
    }
    %c0 = arith.constant 0 : index
    %c0_1 = arith.constant 0 : index
    %c0_2 = arith.constant 0 : index
    %3 = vector.load %arg1[%c0, %c0_1, %c0_2] : memref<1x16x16xf32, #tpu.memory_space<vmem>>, vector<1x16x16xf32>
    %4 = vector.shape_cast %3 : vector<1x16x16xf32> to vector<16x16xf32>
    %c0_3 = arith.constant 0 : index
    %c0_4 = arith.constant 0 : index
    %c0_5 = arith.constant 0 : index
    %5 = vector.load %arg2[%c0_3, %c0_4, %c0_5] : memref<1x16x16xf32, #tpu.memory_space<vmem>>, vector<1x16x16xf32>
    %6 = vector.shape_cast %5 : vector<1x16x16xf32> to vector<16x16xf32>
    %c0_6 = arith.constant 0 : index
    %c0_7 = arith.constant 0 : index
    %7 = vector.load %arg3[%c0_6, %c0_7] : memref<16x128xf32, #tpu.memory_space<vmem>>, vector<16x128xf32>
    %cst = arith.constant dense<0.000000e+00> : vector<16x128xf32>
    %8 = tpu.matmul %4, %7, %cst {dimension_numbers = #tpu.dot_dimension_numbers<[1], [0], [0], [1], [0, 0, 1, 1], [], []>} : vector<16x16xf32>, vector<16x128xf32>, vector<16x128xf32> -> vector<16x128xf32>
    %c0_8 = arith.constant 0 : index
    %c0_9 = arith.constant 0 : index
    %9 = vector.load %arg5[%c0_8, %c0_9] : memref<1x128xf32, #tpu.memory_space<vmem>>, vector<1x128xf32>
    %10 = vector.broadcast %9 : vector<1x128xf32> to vector<16x128xf32>
    %11 = arith.addf %8, %10 : vector<16x128xf32>
    %c0_10 = arith.constant 0 : index
    %c0_11 = arith.constant 0 : index
    %12 = vector.load %arg6[%c0_10, %c0_11] : memref<16x128xf32, #tpu.memory_space<vmem>>, vector<16x128xf32>
    %cst_12 = arith.constant dense<0.000000e+00> : vector<16x128xf32>
    %13 = tpu.matmul %6, %12, %cst_12 {dimension_numbers = #tpu.dot_dimension_numbers<[1], [0], [0], [1], [0, 0, 1, 1], [], []>} : vector<16x16xf32>, vector<16x128xf32>, vector<16x128xf32> -> vector<16x128xf32>
    %c0_13 = arith.constant 0 : index
    %c0_14 = arith.constant 0 : index
    %14 = vector.load %arg8[%c0_13, %c0_14] : memref<1x128xf32, #tpu.memory_space<vmem>>, vector<1x128xf32>
    %15 = vector.broadcast %14 : vector<1x128xf32> to vector<16x128xf32>
    %16 = arith.addf %13, %15 : vector<16x128xf32>
    %c0_15 = arith.constant 0 : index
    %c0_16 = arith.constant 0 : index
    %17 = vector.load %arg12[%c0_15, %c0_16] : memref<2x32xf32, #tpu.memory_space<vmem>>, vector<2x32xf32>
    %c0_17 = arith.constant 0 : index
    %c0_18 = arith.constant 0 : index
    %18 = vector.load %arg13[%c0_17, %c0_18] : memref<2x32xf32, #tpu.memory_space<vmem>>, vector<2x32xf32>
    %c0_19 = arith.constant 0 : index
    %c0_20 = arith.constant 0 : index
    %19 = vector.load %arg14[%c0_19, %c0_20] : memref<2x32xf32, #tpu.memory_space<vmem>>, vector<2x32xf32>
    %c0_21 = arith.constant 0 : index
    %c0_22 = arith.constant 0 : index
    %20 = vector.load %arg15[%c0_21, %c0_22] : memref<2x32xf32, #tpu.memory_space<vmem>>, vector<2x32xf32>
    %c0_23 = arith.constant 0 : index
    %c0_24 = arith.constant 0 : index
    %21 = vector.load %arg16[%c0_23, %c0_24] : memref<2x32xf32, #tpu.memory_space<vmem>>, vector<2x32xf32>
    %c0_25 = arith.constant 0 : index
    %c0_26 = arith.constant 0 : index
    %22 = vector.load %arg17[%c0_25, %c0_26] : memref<2x32xf32, #tpu.memory_space<vmem>>, vector<2x32xf32>
    %c0_27 = arith.constant 0 : index
    %c0_28 = arith.constant 0 : index
    %23 = vector.load %arg18[%c0_27, %c0_28] : memref<2x32xf32, #tpu.memory_space<vmem>>, vector<2x32xf32>
    %c0_29 = arith.constant 0 : index
    %c0_30 = arith.constant 0 : index
    %24 = vector.load %arg19[%c0_29, %c0_30] : memref<2x32xf32, #tpu.memory_space<vmem>>, vector<2x32xf32>
    %c0_31 = arith.constant 0 : index
    %c0_32 = arith.constant 0 : index
    %25 = vector.load %arg4[%c0_31, %c0_32] : memref<32x128xf32, #tpu.memory_space<vmem>>, vector<32x128xf32>
    %c0_33 = arith.constant 0 : index
    %c0_34 = arith.constant 0 : index
    %26 = vector.load %arg7[%c0_33, %c0_34] : memref<32x128xf32, #tpu.memory_space<vmem>>, vector<32x128xf32>
    %27 = vector.extract_strided_slice %11 {offsets = [0, 0], sizes = [2, 128], strides = [1, 1]} : vector<16x128xf32> to vector<2x128xf32>
    %28 = vector.extract_strided_slice %16 {offsets = [14, 0], sizes = [2, 128], strides = [1, 1]} : vector<16x128xf32> to vector<2x128xf32>
    %cst_35 = arith.constant dense<0.000000e+00> : vector<2x128xf32>
    %29 = tpu.matmul %17, %25, %cst_35 {dimension_numbers = #tpu.dot_dimension_numbers<[1], [0], [0], [1], [0, 0, 1, 1], [], []>} : vector<2x32xf32>, vector<32x128xf32>, vector<2x128xf32> -> vector<2x128xf32>
    %30 = arith.addf %27, %29 : vector<2x128xf32>
    %cst_36 = arith.constant dense<0.000000e+00> : vector<2x128xf32>
    %31 = tpu.matmul %19, %26, %cst_36 {dimension_numbers = #tpu.dot_dimension_numbers<[1], [0], [0], [1], [0, 0, 1, 1], [], []>} : vector<2x32xf32>, vector<32x128xf32>, vector<2x128xf32> -> vector<2x128xf32>
    %32 = arith.addf %28, %31 : vector<2x128xf32>
    %33 = vector.extract_strided_slice %30 {offsets = [0, 0], sizes = [2, 96], strides = [1, 1]} : vector<2x128xf32> to vector<2x96xf32>
    %34 = arith.negf %33 : vector<2x96xf32>
    %35 = math.exp %34 : vector<2x96xf32>
    %cst_37 = arith.constant 1.000000e+00 : f32
    %36 = vector.broadcast %cst_37 : f32 to vector<2x96xf32>
    %37 = arith.addf %36, %35 : vector<2x96xf32>
    %38 = arith.divf %36, %37 : vector<2x96xf32>
    %39 = vector.extract_strided_slice %30 {offsets = [0, 96], sizes = [2, 32], strides = [1, 1]} : vector<2x128xf32> to vector<2x32xf32>
    %40 = math.tanh %39 : vector<2x32xf32>
    %41 = vector.extract_strided_slice %32 {offsets = [0, 0], sizes = [2, 96], strides = [1, 1]} : vector<2x128xf32> to vector<2x96xf32>
    %42 = arith.negf %41 : vector<2x96xf32>
    %43 = math.exp %42 : vector<2x96xf32>
    %cst_38 = arith.constant 1.000000e+00 : f32
    %44 = vector.broadcast %cst_38 : f32 to vector<2x96xf32>
    %45 = arith.addf %44, %43 : vector<2x96xf32>
    %46 = arith.divf %44, %45 : vector<2x96xf32>
    %47 = vector.extract_strided_slice %32 {offsets = [0, 96], sizes = [2, 32], strides = [1, 1]} : vector<2x128xf32> to vector<2x32xf32>
    %48 = math.tanh %47 : vector<2x32xf32>
    %49 = vector.extract_strided_slice %38 {offsets = [0, 32], sizes = [2, 32], strides = [1, 1]} : vector<2x96xf32> to vector<2x32xf32>
    %50 = arith.mulf %49, %18 : vector<2x32xf32>
    %51 = vector.extract_strided_slice %38 {offsets = [0, 0], sizes = [2, 32], strides = [1, 1]} : vector<2x96xf32> to vector<2x32xf32>
    %52 = arith.mulf %51, %40 : vector<2x32xf32>
    %53 = arith.addf %50, %52 : vector<2x32xf32>
    %54 = vector.extract_strided_slice %38 {offsets = [0, 64], sizes = [2, 32], strides = [1, 1]} : vector<2x96xf32> to vector<2x32xf32>
    %55 = math.tanh %53 : vector<2x32xf32>
    %56 = arith.mulf %54, %55 : vector<2x32xf32>
    %57 = vector.extract_strided_slice %46 {offsets = [0, 32], sizes = [2, 32], strides = [1, 1]} : vector<2x96xf32> to vector<2x32xf32>
    %58 = arith.mulf %57, %20 : vector<2x32xf32>
    %59 = vector.extract_strided_slice %46 {offsets = [0, 0], sizes = [2, 32], strides = [1, 1]} : vector<2x96xf32> to vector<2x32xf32>
    %60 = arith.mulf %59, %48 : vector<2x32xf32>
    %61 = arith.addf %58, %60 : vector<2x32xf32>
    %62 = vector.extract_strided_slice %46 {offsets = [0, 64], sizes = [2, 32], strides = [1, 1]} : vector<2x96xf32> to vector<2x32xf32>
    %63 = math.tanh %61 : vector<2x32xf32>
    %64 = arith.mulf %62, %63 : vector<2x32xf32>
    %65 = arith.addf %21, %56 : vector<2x32xf32>
    %66 = arith.maximumf %22, %56 : vector<2x32xf32>
    %67 = arith.addf %23, %64 : vector<2x32xf32>
    %68 = arith.maximumf %24, %64 : vector<2x32xf32>
    %69 = vector.extract_strided_slice %11 {offsets = [2, 0], sizes = [2, 128], strides = [1, 1]} : vector<16x128xf32> to vector<2x128xf32>
    %70 = vector.extract_strided_slice %16 {offsets = [12, 0], sizes = [2, 128], strides = [1, 1]} : vector<16x128xf32> to vector<2x128xf32>
    %cst_39 = arith.constant dense<0.000000e+00> : vector<2x128xf32>
    %71 = tpu.matmul %56, %25, %cst_39 {dimension_numbers = #tpu.dot_dimension_numbers<[1], [0], [0], [1], [0, 0, 1, 1], [], []>} : vector<2x32xf32>, vector<32x128xf32>, vector<2x128xf32> -> vector<2x128xf32>
    %72 = arith.addf %69, %71 : vector<2x128xf32>
    %cst_40 = arith.constant dense<0.000000e+00> : vector<2x128xf32>
    %73 = tpu.matmul %64, %26, %cst_40 {dimension_numbers = #tpu.dot_dimension_numbers<[1], [0], [0], [1], [0, 0, 1, 1], [], []>} : vector<2x32xf32>, vector<32x128xf32>, vector<2x128xf32> -> vector<2x128xf32>
    %74 = arith.addf %70, %73 : vector<2x128xf32>
    %75 = vector.extract_strided_slice %72 {offsets = [0, 0], sizes = [2, 96], strides = [1, 1]} : vector<2x128xf32> to vector<2x96xf32>
    %76 = arith.negf %75 : vector<2x96xf32>
    %77 = math.exp %76 : vector<2x96xf32>
    %cst_41 = arith.constant 1.000000e+00 : f32
    %78 = vector.broadcast %cst_41 : f32 to vector<2x96xf32>
    %79 = arith.addf %78, %77 : vector<2x96xf32>
    %80 = arith.divf %78, %79 : vector<2x96xf32>
    %81 = vector.extract_strided_slice %72 {offsets = [0, 96], sizes = [2, 32], strides = [1, 1]} : vector<2x128xf32> to vector<2x32xf32>
    %82 = math.tanh %81 : vector<2x32xf32>
    %83 = vector.extract_strided_slice %74 {offsets = [0, 0], sizes = [2, 96], strides = [1, 1]} : vector<2x128xf32> to vector<2x96xf32>
    %84 = arith.negf %83 : vector<2x96xf32>
    %85 = math.exp %84 : vector<2x96xf32>
    %cst_42 = arith.constant 1.000000e+00 : f32
    %86 = vector.broadcast %cst_42 : f32 to vector<2x96xf32>
    %87 = arith.addf %86, %85 : vector<2x96xf32>
    %88 = arith.divf %86, %87 : vector<2x96xf32>
    %89 = vector.extract_strided_slice %74 {offsets = [0, 96], sizes = [2, 32], strides = [1, 1]} : vector<2x128xf32> to vector<2x32xf32>
    %90 = math.tanh %89 : vector<2x32xf32>
    %91 = vector.extract_strided_slice %80 {offsets = [0, 32], sizes = [2, 32], strides = [1, 1]} : vector<2x96xf32> to vector<2x32xf32>
    %92 = arith.mulf %91, %53 : vector<2x32xf32>
    %93 = vector.extract_strided_slice %80 {offsets = [0, 0], sizes = [2, 32], strides = [1, 1]} : vector<2x96xf32> to vector<2x32xf32>
    %94 = arith.mulf %93, %82 : vector<2x32xf32>
    %95 = arith.addf %92, %94 : vector<2x32xf32>
    %96 = vector.extract_strided_slice %80 {offsets = [0, 64], sizes = [2, 32], strides = [1, 1]} : vector<2x96xf32> to vector<2x32xf32>
    %97 = math.tanh %95 : vector<2x32xf32>
    %98 = arith.mulf %96, %97 : vector<2x32xf32>
    %99 = vector.extract_strided_slice %88 {offsets = [0, 32], sizes = [2, 32], strides = [1, 1]} : vector<2x96xf32> to vector<2x32xf32>
    %100 = arith.mulf %99, %61 : vector<2x32xf32>
    %101 = vector.extract_strided_slice %88 {offsets = [0, 0], sizes = [2, 32], strides = [1, 1]} : vector<2x96xf32> to vector<2x32xf32>
    %102 = arith.mulf %101, %90 : vector<2x32xf32>
    %103 = arith.addf %100, %102 : vector<2x32xf32>
    %104 = vector.extract_strided_slice %88 {offsets = [0, 64], sizes = [2, 32], strides = [1, 1]} : vector<2x96xf32> to vector<2x32xf32>
    %105 = math.tanh %103 : vector<2x32xf32>
    %106 = arith.mulf %104, %105 : vector<2x32xf32>
    %107 = arith.addf %65, %98 : vector<2x32xf32>
    %108 = arith.maximumf %66, %98 : vector<2x32xf32>
    %109 = arith.addf %67, %106 : vector<2x32xf32>
    %110 = arith.maximumf %68, %106 : vector<2x32xf32>
    %111 = vector.extract_strided_slice %11 {offsets = [4, 0], sizes = [2, 128], strides = [1, 1]} : vector<16x128xf32> to vector<2x128xf32>
    %112 = vector.extract_strided_slice %16 {offsets = [10, 0], sizes = [2, 128], strides = [1, 1]} : vector<16x128xf32> to vector<2x128xf32>
    %cst_43 = arith.constant dense<0.000000e+00> : vector<2x128xf32>
    %113 = tpu.matmul %98, %25, %cst_43 {dimension_numbers = #tpu.dot_dimension_numbers<[1], [0], [0], [1], [0, 0, 1, 1], [], []>} : vector<2x32xf32>, vector<32x128xf32>, vector<2x128xf32> -> vector<2x128xf32>
    %114 = arith.addf %111, %113 : vector<2x128xf32>
    %cst_44 = arith.constant dense<0.000000e+00> : vector<2x128xf32>
    %115 = tpu.matmul %106, %26, %cst_44 {dimension_numbers = #tpu.dot_dimension_numbers<[1], [0], [0], [1], [0, 0, 1, 1], [], []>} : vector<2x32xf32>, vector<32x128xf32>, vector<2x128xf32> -> vector<2x128xf32>
    %116 = arith.addf %112, %115 : vector<2x128xf32>
    %117 = vector.extract_strided_slice %114 {offsets = [0, 0], sizes = [2, 96], strides = [1, 1]} : vector<2x128xf32> to vector<2x96xf32>
    %118 = arith.negf %117 : vector<2x96xf32>
    %119 = math.exp %118 : vector<2x96xf32>
    %cst_45 = arith.constant 1.000000e+00 : f32
    %120 = vector.broadcast %cst_45 : f32 to vector<2x96xf32>
    %121 = arith.addf %120, %119 : vector<2x96xf32>
    %122 = arith.divf %120, %121 : vector<2x96xf32>
    %123 = vector.extract_strided_slice %114 {offsets = [0, 96], sizes = [2, 32], strides = [1, 1]} : vector<2x128xf32> to vector<2x32xf32>
    %124 = math.tanh %123 : vector<2x32xf32>
    %125 = vector.extract_strided_slice %116 {offsets = [0, 0], sizes = [2, 96], strides = [1, 1]} : vector<2x128xf32> to vector<2x96xf32>
    %126 = arith.negf %125 : vector<2x96xf32>
    %127 = math.exp %126 : vector<2x96xf32>
    %cst_46 = arith.constant 1.000000e+00 : f32
    %128 = vector.broadcast %cst_46 : f32 to vector<2x96xf32>
    %129 = arith.addf %128, %127 : vector<2x96xf32>
    %130 = arith.divf %128, %129 : vector<2x96xf32>
    %131 = vector.extract_strided_slice %116 {offsets = [0, 96], sizes = [2, 32], strides = [1, 1]} : vector<2x128xf32> to vector<2x32xf32>
    %132 = math.tanh %131 : vector<2x32xf32>
    %133 = vector.extract_strided_slice %122 {offsets = [0, 32], sizes = [2, 32], strides = [1, 1]} : vector<2x96xf32> to vector<2x32xf32>
    %134 = arith.mulf %133, %95 : vector<2x32xf32>
    %135 = vector.extract_strided_slice %122 {offsets = [0, 0], sizes = [2, 32], strides = [1, 1]} : vector<2x96xf32> to vector<2x32xf32>
    %136 = arith.mulf %135, %124 : vector<2x32xf32>
    %137 = arith.addf %134, %136 : vector<2x32xf32>
    %138 = vector.extract_strided_slice %122 {offsets = [0, 64], sizes = [2, 32], strides = [1, 1]} : vector<2x96xf32> to vector<2x32xf32>
    %139 = math.tanh %137 : vector<2x32xf32>
    %140 = arith.mulf %138, %139 : vector<2x32xf32>
    %141 = vector.extract_strided_slice %130 {offsets = [0, 32], sizes = [2, 32], strides = [1, 1]} : vector<2x96xf32> to vector<2x32xf32>
    %142 = arith.mulf %141, %103 : vector<2x32xf32>
    %143 = vector.extract_strided_slice %130 {offsets = [0, 0], sizes = [2, 32], strides = [1, 1]} : vector<2x96xf32> to vector<2x32xf32>
    %144 = arith.mulf %143, %132 : vector<2x32xf32>
    %145 = arith.addf %142, %144 : vector<2x32xf32>
    %146 = vector.extract_strided_slice %130 {offsets = [0, 64], sizes = [2, 32], strides = [1, 1]} : vector<2x96xf32> to vector<2x32xf32>
    %147 = math.tanh %145 : vector<2x32xf32>
    %148 = arith.mulf %146, %147 : vector<2x32xf32>
    %149 = arith.addf %107, %140 : vector<2x32xf32>
    %150 = arith.maximumf %108, %140 : vector<2x32xf32>
    %151 = arith.addf %109, %148 : vector<2x32xf32>
    %152 = arith.maximumf %110, %148 : vector<2x32xf32>
    %153 = vector.extract_strided_slice %11 {offsets = [6, 0], sizes = [2, 128], strides = [1, 1]} : vector<16x128xf32> to vector<2x128xf32>
    %154 = vector.extract_strided_slice %16 {offsets = [8, 0], sizes = [2, 128], strides = [1, 1]} : vector<16x128xf32> to vector<2x128xf32>
    %cst_47 = arith.constant dense<0.000000e+00> : vector<2x128xf32>
    %155 = tpu.matmul %140, %25, %cst_47 {dimension_numbers = #tpu.dot_dimension_numbers<[1], [0], [0], [1], [0, 0, 1, 1], [], []>} : vector<2x32xf32>, vector<32x128xf32>, vector<2x128xf32> -> vector<2x128xf32>
    %156 = arith.addf %153, %155 : vector<2x128xf32>
    %cst_48 = arith.constant dense<0.000000e+00> : vector<2x128xf32>
    %157 = tpu.matmul %148, %26, %cst_48 {dimension_numbers = #tpu.dot_dimension_numbers<[1], [0], [0], [1], [0, 0, 1, 1], [], []>} : vector<2x32xf32>, vector<32x128xf32>, vector<2x128xf32> -> vector<2x128xf32>
    %158 = arith.addf %154, %157 : vector<2x128xf32>
    %159 = vector.extract_strided_slice %156 {offsets = [0, 0], sizes = [2, 96], strides = [1, 1]} : vector<2x128xf32> to vector<2x96xf32>
    %160 = arith.negf %159 : vector<2x96xf32>
    %161 = math.exp %160 : vector<2x96xf32>
    %cst_49 = arith.constant 1.000000e+00 : f32
    %162 = vector.broadcast %cst_49 : f32 to vector<2x96xf32>
    %163 = arith.addf %162, %161 : vector<2x96xf32>
    %164 = arith.divf %162, %163 : vector<2x96xf32>
    %165 = vector.extract_strided_slice %156 {offsets = [0, 96], sizes = [2, 32], strides = [1, 1]} : vector<2x128xf32> to vector<2x32xf32>
    %166 = math.tanh %165 : vector<2x32xf32>
    %167 = vector.extract_strided_slice %158 {offsets = [0, 0], sizes = [2, 96], strides = [1, 1]} : vector<2x128xf32> to vector<2x96xf32>
    %168 = arith.negf %167 : vector<2x96xf32>
    %169 = math.exp %168 : vector<2x96xf32>
    %cst_50 = arith.constant 1.000000e+00 : f32
    %170 = vector.broadcast %cst_50 : f32 to vector<2x96xf32>
    %171 = arith.addf %170, %169 : vector<2x96xf32>
    %172 = arith.divf %170, %171 : vector<2x96xf32>
    %173 = vector.extract_strided_slice %158 {offsets = [0, 96], sizes = [2, 32], strides = [1, 1]} : vector<2x128xf32> to vector<2x32xf32>
    %174 = math.tanh %173 : vector<2x32xf32>
    %175 = vector.extract_strided_slice %164 {offsets = [0, 32], sizes = [2, 32], strides = [1, 1]} : vector<2x96xf32> to vector<2x32xf32>
    %176 = arith.mulf %175, %137 : vector<2x32xf32>
    %177 = vector.extract_strided_slice %164 {offsets = [0, 0], sizes = [2, 32], strides = [1, 1]} : vector<2x96xf32> to vector<2x32xf32>
    %178 = arith.mulf %177, %166 : vector<2x32xf32>
    %179 = arith.addf %176, %178 : vector<2x32xf32>
    %180 = vector.extract_strided_slice %164 {offsets = [0, 64], sizes = [2, 32], strides = [1, 1]} : vector<2x96xf32> to vector<2x32xf32>
    %181 = math.tanh %179 : vector<2x32xf32>
    %182 = arith.mulf %180, %181 : vector<2x32xf32>
    %183 = vector.extract_strided_slice %172 {offsets = [0, 32], sizes = [2, 32], strides = [1, 1]} : vector<2x96xf32> to vector<2x32xf32>
    %184 = arith.mulf %183, %145 : vector<2x32xf32>
    %185 = vector.extract_strided_slice %172 {offsets = [0, 0], sizes = [2, 32], strides = [1, 1]} : vector<2x96xf32> to vector<2x32xf32>
    %186 = arith.mulf %185, %174 : vector<2x32xf32>
    %187 = arith.addf %184, %186 : vector<2x32xf32>
    %188 = vector.extract_strided_slice %172 {offsets = [0, 64], sizes = [2, 32], strides = [1, 1]} : vector<2x96xf32> to vector<2x32xf32>
    %189 = math.tanh %187 : vector<2x32xf32>
    %190 = arith.mulf %188, %189 : vector<2x32xf32>
    %191 = arith.addf %149, %182 : vector<2x32xf32>
    %192 = arith.maximumf %150, %182 : vector<2x32xf32>
    %193 = arith.addf %151, %190 : vector<2x32xf32>
    %194 = arith.maximumf %152, %190 : vector<2x32xf32>
    %195 = vector.extract_strided_slice %11 {offsets = [8, 0], sizes = [2, 128], strides = [1, 1]} : vector<16x128xf32> to vector<2x128xf32>
    %196 = vector.extract_strided_slice %16 {offsets = [6, 0], sizes = [2, 128], strides = [1, 1]} : vector<16x128xf32> to vector<2x128xf32>
    %cst_51 = arith.constant dense<0.000000e+00> : vector<2x128xf32>
    %197 = tpu.matmul %182, %25, %cst_51 {dimension_numbers = #tpu.dot_dimension_numbers<[1], [0], [0], [1], [0, 0, 1, 1], [], []>} : vector<2x32xf32>, vector<32x128xf32>, vector<2x128xf32> -> vector<2x128xf32>
    %198 = arith.addf %195, %197 : vector<2x128xf32>
    %cst_52 = arith.constant dense<0.000000e+00> : vector<2x128xf32>
    %199 = tpu.matmul %190, %26, %cst_52 {dimension_numbers = #tpu.dot_dimension_numbers<[1], [0], [0], [1], [0, 0, 1, 1], [], []>} : vector<2x32xf32>, vector<32x128xf32>, vector<2x128xf32> -> vector<2x128xf32>
    %200 = arith.addf %196, %199 : vector<2x128xf32>
    %201 = vector.extract_strided_slice %198 {offsets = [0, 0], sizes = [2, 96], strides = [1, 1]} : vector<2x128xf32> to vector<2x96xf32>
    %202 = arith.negf %201 : vector<2x96xf32>
    %203 = math.exp %202 : vector<2x96xf32>
    %cst_53 = arith.constant 1.000000e+00 : f32
    %204 = vector.broadcast %cst_53 : f32 to vector<2x96xf32>
    %205 = arith.addf %204, %203 : vector<2x96xf32>
    %206 = arith.divf %204, %205 : vector<2x96xf32>
    %207 = vector.extract_strided_slice %198 {offsets = [0, 96], sizes = [2, 32], strides = [1, 1]} : vector<2x128xf32> to vector<2x32xf32>
    %208 = math.tanh %207 : vector<2x32xf32>
    %209 = vector.extract_strided_slice %200 {offsets = [0, 0], sizes = [2, 96], strides = [1, 1]} : vector<2x128xf32> to vector<2x96xf32>
    %210 = arith.negf %209 : vector<2x96xf32>
    %211 = math.exp %210 : vector<2x96xf32>
    %cst_54 = arith.constant 1.000000e+00 : f32
    %212 = vector.broadcast %cst_54 : f32 to vector<2x96xf32>
    %213 = arith.addf %212, %211 : vector<2x96xf32>
    %214 = arith.divf %212, %213 : vector<2x96xf32>
    %215 = vector.extract_strided_slice %200 {offsets = [0, 96], sizes = [2, 32], strides = [1, 1]} : vector<2x128xf32> to vector<2x32xf32>
    %216 = math.tanh %215 : vector<2x32xf32>
    %217 = vector.extract_strided_slice %206 {offsets = [0, 32], sizes = [2, 32], strides = [1, 1]} : vector<2x96xf32> to vector<2x32xf32>
    %218 = arith.mulf %217, %179 : vector<2x32xf32>
    %219 = vector.extract_strided_slice %206 {offsets = [0, 0], sizes = [2, 32], strides = [1, 1]} : vector<2x96xf32> to vector<2x32xf32>
    %220 = arith.mulf %219, %208 : vector<2x32xf32>
    %221 = arith.addf %218, %220 : vector<2x32xf32>
    %222 = vector.extract_strided_slice %206 {offsets = [0, 64], sizes = [2, 32], strides = [1, 1]} : vector<2x96xf32> to vector<2x32xf32>
    %223 = math.tanh %221 : vector<2x32xf32>
    %224 = arith.mulf %222, %223 : vector<2x32xf32>
    %225 = vector.extract_strided_slice %214 {offsets = [0, 32], sizes = [2, 32], strides = [1, 1]} : vector<2x96xf32> to vector<2x32xf32>
    %226 = arith.mulf %225, %187 : vector<2x32xf32>
    %227 = vector.extract_strided_slice %214 {offsets = [0, 0], sizes = [2, 32], strides = [1, 1]} : vector<2x96xf32> to vector<2x32xf32>
    %228 = arith.mulf %227, %216 : vector<2x32xf32>
    %229 = arith.addf %226, %228 : vector<2x32xf32>
    %230 = vector.extract_strided_slice %214 {offsets = [0, 64], sizes = [2, 32], strides = [1, 1]} : vector<2x96xf32> to vector<2x32xf32>
    %231 = math.tanh %229 : vector<2x32xf32>
    %232 = arith.mulf %230, %231 : vector<2x32xf32>
    %233 = arith.addf %191, %224 : vector<2x32xf32>
    %234 = arith.maximumf %192, %224 : vector<2x32xf32>
    %235 = arith.addf %193, %232 : vector<2x32xf32>
    %236 = arith.maximumf %194, %232 : vector<2x32xf32>
    %237 = vector.extract_strided_slice %11 {offsets = [10, 0], sizes = [2, 128], strides = [1, 1]} : vector<16x128xf32> to vector<2x128xf32>
    %238 = vector.extract_strided_slice %16 {offsets = [4, 0], sizes = [2, 128], strides = [1, 1]} : vector<16x128xf32> to vector<2x128xf32>
    %cst_55 = arith.constant dense<0.000000e+00> : vector<2x128xf32>
    %239 = tpu.matmul %224, %25, %cst_55 {dimension_numbers = #tpu.dot_dimension_numbers<[1], [0], [0], [1], [0, 0, 1, 1], [], []>} : vector<2x32xf32>, vector<32x128xf32>, vector<2x128xf32> -> vector<2x128xf32>
    %240 = arith.addf %237, %239 : vector<2x128xf32>
    %cst_56 = arith.constant dense<0.000000e+00> : vector<2x128xf32>
    %241 = tpu.matmul %232, %26, %cst_56 {dimension_numbers = #tpu.dot_dimension_numbers<[1], [0], [0], [1], [0, 0, 1, 1], [], []>} : vector<2x32xf32>, vector<32x128xf32>, vector<2x128xf32> -> vector<2x128xf32>
    %242 = arith.addf %238, %241 : vector<2x128xf32>
    %243 = vector.extract_strided_slice %240 {offsets = [0, 0], sizes = [2, 96], strides = [1, 1]} : vector<2x128xf32> to vector<2x96xf32>
    %244 = arith.negf %243 : vector<2x96xf32>
    %245 = math.exp %244 : vector<2x96xf32>
    %cst_57 = arith.constant 1.000000e+00 : f32
    %246 = vector.broadcast %cst_57 : f32 to vector<2x96xf32>
    %247 = arith.addf %246, %245 : vector<2x96xf32>
    %248 = arith.divf %246, %247 : vector<2x96xf32>
    %249 = vector.extract_strided_slice %240 {offsets = [0, 96], sizes = [2, 32], strides = [1, 1]} : vector<2x128xf32> to vector<2x32xf32>
    %250 = math.tanh %249 : vector<2x32xf32>
    %251 = vector.extract_strided_slice %242 {offsets = [0, 0], sizes = [2, 96], strides = [1, 1]} : vector<2x128xf32> to vector<2x96xf32>
    %252 = arith.negf %251 : vector<2x96xf32>
    %253 = math.exp %252 : vector<2x96xf32>
    %cst_58 = arith.constant 1.000000e+00 : f32
    %254 = vector.broadcast %cst_58 : f32 to vector<2x96xf32>
    %255 = arith.addf %254, %253 : vector<2x96xf32>
    %256 = arith.divf %254, %255 : vector<2x96xf32>
    %257 = vector.extract_strided_slice %242 {offsets = [0, 96], sizes = [2, 32], strides = [1, 1]} : vector<2x128xf32> to vector<2x32xf32>
    %258 = math.tanh %257 : vector<2x32xf32>
    %259 = vector.extract_strided_slice %248 {offsets = [0, 32], sizes = [2, 32], strides = [1, 1]} : vector<2x96xf32> to vector<2x32xf32>
    %260 = arith.mulf %259, %221 : vector<2x32xf32>
    %261 = vector.extract_strided_slice %248 {offsets = [0, 0], sizes = [2, 32], strides = [1, 1]} : vector<2x96xf32> to vector<2x32xf32>
    %262 = arith.mulf %261, %250 : vector<2x32xf32>
    %263 = arith.addf %260, %262 : vector<2x32xf32>
    %264 = vector.extract_strided_slice %248 {offsets = [0, 64], sizes = [2, 32], strides = [1, 1]} : vector<2x96xf32> to vector<2x32xf32>
    %265 = math.tanh %263 : vector<2x32xf32>
    %266 = arith.mulf %264, %265 : vector<2x32xf32>
    %267 = vector.extract_strided_slice %256 {offsets = [0, 32], sizes = [2, 32], strides = [1, 1]} : vector<2x96xf32> to vector<2x32xf32>
    %268 = arith.mulf %267, %229 : vector<2x32xf32>
    %269 = vector.extract_strided_slice %256 {offsets = [0, 0], sizes = [2, 32], strides = [1, 1]} : vector<2x96xf32> to vector<2x32xf32>
    %270 = arith.mulf %269, %258 : vector<2x32xf32>
    %271 = arith.addf %268, %270 : vector<2x32xf32>
    %272 = vector.extract_strided_slice %256 {offsets = [0, 64], sizes = [2, 32], strides = [1, 1]} : vector<2x96xf32> to vector<2x32xf32>
    %273 = math.tanh %271 : vector<2x32xf32>
    %274 = arith.mulf %272, %273 : vector<2x32xf32>
    %275 = arith.addf %233, %266 : vector<2x32xf32>
    %276 = arith.maximumf %234, %266 : vector<2x32xf32>
    %277 = arith.addf %235, %274 : vector<2x32xf32>
    %278 = arith.maximumf %236, %274 : vector<2x32xf32>
    %279 = vector.extract_strided_slice %11 {offsets = [12, 0], sizes = [2, 128], strides = [1, 1]} : vector<16x128xf32> to vector<2x128xf32>
    %280 = vector.extract_strided_slice %16 {offsets = [2, 0], sizes = [2, 128], strides = [1, 1]} : vector<16x128xf32> to vector<2x128xf32>
    %cst_59 = arith.constant dense<0.000000e+00> : vector<2x128xf32>
    %281 = tpu.matmul %266, %25, %cst_59 {dimension_numbers = #tpu.dot_dimension_numbers<[1], [0], [0], [1], [0, 0, 1, 1], [], []>} : vector<2x32xf32>, vector<32x128xf32>, vector<2x128xf32> -> vector<2x128xf32>
    %282 = arith.addf %279, %281 : vector<2x128xf32>
    %cst_60 = arith.constant dense<0.000000e+00> : vector<2x128xf32>
    %283 = tpu.matmul %274, %26, %cst_60 {dimension_numbers = #tpu.dot_dimension_numbers<[1], [0], [0], [1], [0, 0, 1, 1], [], []>} : vector<2x32xf32>, vector<32x128xf32>, vector<2x128xf32> -> vector<2x128xf32>
    %284 = arith.addf %280, %283 : vector<2x128xf32>
    %285 = vector.extract_strided_slice %282 {offsets = [0, 0], sizes = [2, 96], strides = [1, 1]} : vector<2x128xf32> to vector<2x96xf32>
    %286 = arith.negf %285 : vector<2x96xf32>
    %287 = math.exp %286 : vector<2x96xf32>
    %cst_61 = arith.constant 1.000000e+00 : f32
    %288 = vector.broadcast %cst_61 : f32 to vector<2x96xf32>
    %289 = arith.addf %288, %287 : vector<2x96xf32>
    %290 = arith.divf %288, %289 : vector<2x96xf32>
    %291 = vector.extract_strided_slice %282 {offsets = [0, 96], sizes = [2, 32], strides = [1, 1]} : vector<2x128xf32> to vector<2x32xf32>
    %292 = math.tanh %291 : vector<2x32xf32>
    %293 = vector.extract_strided_slice %284 {offsets = [0, 0], sizes = [2, 96], strides = [1, 1]} : vector<2x128xf32> to vector<2x96xf32>
    %294 = arith.negf %293 : vector<2x96xf32>
    %295 = math.exp %294 : vector<2x96xf32>
    %cst_62 = arith.constant 1.000000e+00 : f32
    %296 = vector.broadcast %cst_62 : f32 to vector<2x96xf32>
    %297 = arith.addf %296, %295 : vector<2x96xf32>
    %298 = arith.divf %296, %297 : vector<2x96xf32>
    %299 = vector.extract_strided_slice %284 {offsets = [0, 96], sizes = [2, 32], strides = [1, 1]} : vector<2x128xf32> to vector<2x32xf32>
    %300 = math.tanh %299 : vector<2x32xf32>
    %301 = vector.extract_strided_slice %290 {offsets = [0, 32], sizes = [2, 32], strides = [1, 1]} : vector<2x96xf32> to vector<2x32xf32>
    %302 = arith.mulf %301, %263 : vector<2x32xf32>
    %303 = vector.extract_strided_slice %290 {offsets = [0, 0], sizes = [2, 32], strides = [1, 1]} : vector<2x96xf32> to vector<2x32xf32>
    %304 = arith.mulf %303, %292 : vector<2x32xf32>
    %305 = arith.addf %302, %304 : vector<2x32xf32>
    %306 = vector.extract_strided_slice %290 {offsets = [0, 64], sizes = [2, 32], strides = [1, 1]} : vector<2x96xf32> to vector<2x32xf32>
    %307 = math.tanh %305 : vector<2x32xf32>
    %308 = arith.mulf %306, %307 : vector<2x32xf32>
    %309 = vector.extract_strided_slice %298 {offsets = [0, 32], sizes = [2, 32], strides = [1, 1]} : vector<2x96xf32> to vector<2x32xf32>
    %310 = arith.mulf %309, %271 : vector<2x32xf32>
    %311 = vector.extract_strided_slice %298 {offsets = [0, 0], sizes = [2, 32], strides = [1, 1]} : vector<2x96xf32> to vector<2x32xf32>
    %312 = arith.mulf %311, %300 : vector<2x32xf32>
    %313 = arith.addf %310, %312 : vector<2x32xf32>
    %314 = vector.extract_strided_slice %298 {offsets = [0, 64], sizes = [2, 32], strides = [1, 1]} : vector<2x96xf32> to vector<2x32xf32>
    %315 = math.tanh %313 : vector<2x32xf32>
    %316 = arith.mulf %314, %315 : vector<2x32xf32>
    %317 = arith.addf %275, %308 : vector<2x32xf32>
    %318 = arith.maximumf %276, %308 : vector<2x32xf32>
    %319 = arith.addf %277, %316 : vector<2x32xf32>
    %320 = arith.maximumf %278, %316 : vector<2x32xf32>
    %321 = vector.extract_strided_slice %11 {offsets = [14, 0], sizes = [2, 128], strides = [1, 1]} : vector<16x128xf32> to vector<2x128xf32>
    %322 = vector.extract_strided_slice %16 {offsets = [0, 0], sizes = [2, 128], strides = [1, 1]} : vector<16x128xf32> to vector<2x128xf32>
    %cst_63 = arith.constant dense<0.000000e+00> : vector<2x128xf32>
    %323 = tpu.matmul %308, %25, %cst_63 {dimension_numbers = #tpu.dot_dimension_numbers<[1], [0], [0], [1], [0, 0, 1, 1], [], []>} : vector<2x32xf32>, vector<32x128xf32>, vector<2x128xf32> -> vector<2x128xf32>
    %324 = arith.addf %321, %323 : vector<2x128xf32>
    %cst_64 = arith.constant dense<0.000000e+00> : vector<2x128xf32>
    %325 = tpu.matmul %316, %26, %cst_64 {dimension_numbers = #tpu.dot_dimension_numbers<[1], [0], [0], [1], [0, 0, 1, 1], [], []>} : vector<2x32xf32>, vector<32x128xf32>, vector<2x128xf32> -> vector<2x128xf32>
    %326 = arith.addf %322, %325 : vector<2x128xf32>
    %327 = vector.extract_strided_slice %324 {offsets = [0, 0], sizes = [2, 96], strides = [1, 1]} : vector<2x128xf32> to vector<2x96xf32>
    %328 = arith.negf %327 : vector<2x96xf32>
    %329 = math.exp %328 : vector<2x96xf32>
    %cst_65 = arith.constant 1.000000e+00 : f32
    %330 = vector.broadcast %cst_65 : f32 to vector<2x96xf32>
    %331 = arith.addf %330, %329 : vector<2x96xf32>
    %332 = arith.divf %330, %331 : vector<2x96xf32>
    %333 = vector.extract_strided_slice %324 {offsets = [0, 96], sizes = [2, 32], strides = [1, 1]} : vector<2x128xf32> to vector<2x32xf32>
    %334 = math.tanh %333 : vector<2x32xf32>
    %335 = vector.extract_strided_slice %326 {offsets = [0, 0], sizes = [2, 96], strides = [1, 1]} : vector<2x128xf32> to vector<2x96xf32>
    %336 = arith.negf %335 : vector<2x96xf32>
    %337 = math.exp %336 : vector<2x96xf32>
    %cst_66 = arith.constant 1.000000e+00 : f32
    %338 = vector.broadcast %cst_66 : f32 to vector<2x96xf32>
    %339 = arith.addf %338, %337 : vector<2x96xf32>
    %340 = arith.divf %338, %339 : vector<2x96xf32>
    %341 = vector.extract_strided_slice %326 {offsets = [0, 96], sizes = [2, 32], strides = [1, 1]} : vector<2x128xf32> to vector<2x32xf32>
    %342 = math.tanh %341 : vector<2x32xf32>
    %343 = vector.extract_strided_slice %332 {offsets = [0, 32], sizes = [2, 32], strides = [1, 1]} : vector<2x96xf32> to vector<2x32xf32>
    %344 = arith.mulf %343, %305 : vector<2x32xf32>
    %345 = vector.extract_strided_slice %332 {offsets = [0, 0], sizes = [2, 32], strides = [1, 1]} : vector<2x96xf32> to vector<2x32xf32>
    %346 = arith.mulf %345, %334 : vector<2x32xf32>
    %347 = arith.addf %344, %346 : vector<2x32xf32>
    %348 = vector.extract_strided_slice %332 {offsets = [0, 64], sizes = [2, 32], strides = [1, 1]} : vector<2x96xf32> to vector<2x32xf32>
    %349 = math.tanh %347 : vector<2x32xf32>
    %350 = arith.mulf %348, %349 : vector<2x32xf32>
    %351 = vector.extract_strided_slice %340 {offsets = [0, 32], sizes = [2, 32], strides = [1, 1]} : vector<2x96xf32> to vector<2x32xf32>
    %352 = arith.mulf %351, %313 : vector<2x32xf32>
    %353 = vector.extract_strided_slice %340 {offsets = [0, 0], sizes = [2, 32], strides = [1, 1]} : vector<2x96xf32> to vector<2x32xf32>
    %354 = arith.mulf %353, %342 : vector<2x32xf32>
    %355 = arith.addf %352, %354 : vector<2x32xf32>
    %356 = vector.extract_strided_slice %340 {offsets = [0, 64], sizes = [2, 32], strides = [1, 1]} : vector<2x96xf32> to vector<2x32xf32>
    %357 = math.tanh %355 : vector<2x32xf32>
    %358 = arith.mulf %356, %357 : vector<2x32xf32>
    %359 = arith.addf %317, %350 : vector<2x32xf32>
    %360 = arith.maximumf %318, %350 : vector<2x32xf32>
    %361 = arith.addf %319, %358 : vector<2x32xf32>
    %362 = arith.maximumf %320, %358 : vector<2x32xf32>
    %c0_67 = arith.constant 0 : index
    %c0_68 = arith.constant 0 : index
    %363 = vector.load %arg12[%c0_67, %c0_68] : memref<2x32xf32, #tpu.memory_space<vmem>>, vector<2x32xf32>
    tpu.vector_store %arg12[%c0_67, %c0_68], %350 {strides = array<i32>} : memref<2x32xf32, #tpu.memory_space<vmem>>, vector<2x32xf32>,
    %c0_69 = arith.constant 0 : index
    %c0_70 = arith.constant 0 : index
    %364 = vector.load %arg13[%c0_69, %c0_70] : memref<2x32xf32, #tpu.memory_space<vmem>>, vector<2x32xf32>
    tpu.vector_store %arg13[%c0_69, %c0_70], %347 {strides = array<i32>} : memref<2x32xf32, #tpu.memory_space<vmem>>, vector<2x32xf32>,
    %c0_71 = arith.constant 0 : index
    %c0_72 = arith.constant 0 : index
    %365 = vector.load %arg14[%c0_71, %c0_72] : memref<2x32xf32, #tpu.memory_space<vmem>>, vector<2x32xf32>
    tpu.vector_store %arg14[%c0_71, %c0_72], %358 {strides = array<i32>} : memref<2x32xf32, #tpu.memory_space<vmem>>, vector<2x32xf32>,
    %c0_73 = arith.constant 0 : index
    %c0_74 = arith.constant 0 : index
    %366 = vector.load %arg15[%c0_73, %c0_74] : memref<2x32xf32, #tpu.memory_space<vmem>>, vector<2x32xf32>
    tpu.vector_store %arg15[%c0_73, %c0_74], %355 {strides = array<i32>} : memref<2x32xf32, #tpu.memory_space<vmem>>, vector<2x32xf32>,
    %c0_75 = arith.constant 0 : index
    %c0_76 = arith.constant 0 : index
    %367 = vector.load %arg16[%c0_75, %c0_76] : memref<2x32xf32, #tpu.memory_space<vmem>>, vector<2x32xf32>
    tpu.vector_store %arg16[%c0_75, %c0_76], %359 {strides = array<i32>} : memref<2x32xf32, #tpu.memory_space<vmem>>, vector<2x32xf32>,
    %c0_77 = arith.constant 0 : index
    %c0_78 = arith.constant 0 : index
    %368 = vector.load %arg17[%c0_77, %c0_78] : memref<2x32xf32, #tpu.memory_space<vmem>>, vector<2x32xf32>
    tpu.vector_store %arg17[%c0_77, %c0_78], %360 {strides = array<i32>} : memref<2x32xf32, #tpu.memory_space<vmem>>, vector<2x32xf32>,
    %c0_79 = arith.constant 0 : index
    %c0_80 = arith.constant 0 : index
    %369 = vector.load %arg18[%c0_79, %c0_80] : memref<2x32xf32, #tpu.memory_space<vmem>>, vector<2x32xf32>
    tpu.vector_store %arg18[%c0_79, %c0_80], %361 {strides = array<i32>} : memref<2x32xf32, #tpu.memory_space<vmem>>, vector<2x32xf32>,
    %c0_81 = arith.constant 0 : index
    %c0_82 = arith.constant 0 : index
    %370 = vector.load %arg19[%c0_81, %c0_82] : memref<2x32xf32, #tpu.memory_space<vmem>>, vector<2x32xf32>
    tpu.vector_store %arg19[%c0_81, %c0_82], %362 {strides = array<i32>} : memref<2x32xf32, #tpu.memory_space<vmem>>, vector<2x32xf32>,
    %c1_i32 = arith.constant 1 : i32
    %371 = arith.cmpi eq, %arg0, %c1_i32 : i32
    %372 = arith.extui %371 : i1 to i32
    %c0_i32_83 = arith.constant 0 : i32
    %373 = arith.cmpi ne, %372, %c0_i32_83 : i32
    scf.if %373 {
      %374 = tpu.concatenate %359, %361 in 1 : vector<2x32xf32>, vector<2x32xf32> -> vector<2x64xf32>
      %cst_84 = arith.constant 6.250000e-02 : f32
      %375 = vector.broadcast %cst_84 : f32 to vector<2x64xf32>
      %376 = arith.mulf %374, %375 : vector<2x64xf32>
      %377 = tpu.concatenate %360, %362 in 1 : vector<2x32xf32>, vector<2x32xf32> -> vector<2x64xf32>
      %378 = tpu.concatenate %376, %377 in 1 : vector<2x64xf32>, vector<2x64xf32> -> vector<2x128xf32>
      %c0_85 = arith.constant 0 : index
      %c0_86 = arith.constant 0 : index
      %379 = vector.load %arg9[%c0_85, %c0_86] : memref<128x4xf32, #tpu.memory_space<vmem>>, vector<128x4xf32>
      %cst_87 = arith.constant dense<0.000000e+00> : vector<2x4xf32>
      %380 = tpu.matmul %378, %379, %cst_87 {dimension_numbers = #tpu.dot_dimension_numbers<[1], [0], [0], [1], [0, 0, 1, 1], [], []>} : vector<2x128xf32>, vector<128x4xf32>, vector<2x4xf32> -> vector<2x4xf32>
      %c0_88 = arith.constant 0 : index
      %c0_89 = arith.constant 0 : index
      %381 = vector.load %arg10[%c0_88, %c0_89] : memref<1x4xf32, #tpu.memory_space<vmem>>, vector<1x4xf32>
      %382 = vector.broadcast %381 : vector<1x4xf32> to vector<2x4xf32>
      %383 = arith.addf %380, %382 : vector<2x4xf32>
      %384 = arith.negf %383 : vector<2x4xf32>
      %385 = math.exp %384 : vector<2x4xf32>
      %cst_90 = arith.constant 1.000000e+00 : f32
      %386 = vector.broadcast %cst_90 : f32 to vector<2x4xf32>
      %387 = arith.addf %386, %385 : vector<2x4xf32>
      %388 = arith.divf %386, %387 : vector<2x4xf32>
      %c0_91 = arith.constant 0 : index
      %c0_92 = arith.constant 0 : index
      %389 = vector.load %arg11[%c0_91, %c0_92] : memref<2x4xf32, #tpu.memory_space<vmem>>, vector<2x4xf32>
      tpu.vector_store %arg11[%c0_91, %c0_92], %388 {strides = array<i32>} : memref<2x4xf32, #tpu.memory_space<vmem>>, vector<2x4xf32>,
    } else {
    }
    return
  }
  func.func @transform_0(%arg0: i32) -> (i32, i32, i32) {
    %c0_i32 = arith.constant 0 : i32
    %c0_i32_0 = arith.constant 0 : i32
    %c0_i32_1 = arith.constant 0 : i32
    return %arg0, %c0_i32, %c0_i32_0 : i32, i32, i32
  }
  func.func @transform_1(%arg0: i32) -> (i32, i32, i32) {
    %c1_i32 = arith.constant 1 : i32
    %0 = arith.subi %c1_i32, %arg0 : i32
    %c0_i32 = arith.constant 0 : i32
    %c0_i32_0 = arith.constant 0 : i32
    %c0_i32_1 = arith.constant 0 : i32
    return %0, %c0_i32, %c0_i32_0 : i32, i32, i32
  }
  func.func @transform_2(%arg0: i32) -> (i32, i32) {
    %c0_i32 = arith.constant 0 : i32
    %c0_i32_0 = arith.constant 0 : i32
    %c0_i32_1 = arith.constant 0 : i32
    return %c0_i32, %c0_i32_0 : i32, i32
  }
  func.func @transform_3(%arg0: i32) -> (i32, i32) {
    %c0_i32 = arith.constant 0 : i32
    %c0_i32_0 = arith.constant 0 : i32
    %c0_i32_1 = arith.constant 0 : i32
    return %c0_i32, %c0_i32_0 : i32, i32
  }
  func.func @transform_4(%arg0: i32) -> (i32, i32) {
    %c0_i32 = arith.constant 0 : i32
    %c0_i32_0 = arith.constant 0 : i32
    %c0_i32_1 = arith.constant 0 : i32
    return %c0_i32, %c0_i32_0 : i32, i32
  }
  func.func @transform_5(%arg0: i32) -> (i32, i32) {
    %c0_i32 = arith.constant 0 : i32
    %c0_i32_0 = arith.constant 0 : i32
    %c0_i32_1 = arith.constant 0 : i32
    return %c0_i32, %c0_i32_0 : i32, i32
  }
  func.func @transform_6(%arg0: i32) -> (i32, i32) {
    %c0_i32 = arith.constant 0 : i32
    %c0_i32_0 = arith.constant 0 : i32
    %c0_i32_1 = arith.constant 0 : i32
    return %c0_i32, %c0_i32_0 : i32, i32
  }
  func.func @transform_7(%arg0: i32) -> (i32, i32) {
    %c0_i32 = arith.constant 0 : i32
    %c0_i32_0 = arith.constant 0 : i32
    %c0_i32_1 = arith.constant 0 : i32
    return %c0_i32, %c0_i32_0 : i32, i32
  }
  func.func @transform_8(%arg0: i32) -> (i32, i32) {
    %c0_i32 = arith.constant 0 : i32
    %c0_i32_0 = arith.constant 0 : i32
    %c0_i32_1 = arith.constant 0 : i32
    return %c0_i32, %c0_i32_0 : i32, i32
  }
  func.func @transform_9(%arg0: i32) -> (i32, i32) {
    %c0_i32 = arith.constant 0 : i32
    %c0_i32_0 = arith.constant 0 : i32
    %c0_i32_1 = arith.constant 0 : i32
    return %c0_i32, %c0_i32_0 : i32, i32
  }
  func.func @transform_10(%arg0: i32) -> (i32, i32) {
    %c0_i32 = arith.constant 0 : i32
    %c0_i32_0 = arith.constant 0 : i32
    %c0_i32_1 = arith.constant 0 : i32
    return %c0_i32, %c0_i32_0 : i32, i32
  }
}

</mosaic_0001>

<bundles_post_ra>
// kernel: tpu_custom_call.1
= control target key start
LH: loop header
LB: loop body
LE: loop exit
PB: predicated region body
PF: predicated region fallthrough
CT: control target
= control target key end

     0   :  { %15 = vsyncpa [#allocation11], 0  ;;  %s3922_s0 = inlined_call_operand.vmem [shape: f32[2,16,16], index: 0, kind: input, shape index: {}]   ;;  %s3923_s1 = inlined_call_operand.vmem [shape: f32[2,16,16], index: 1, kind: input, shape index: {}]   ;;  %s3924_s2 = inlined_call_operand.hbm [shape: f32[16,128], index: 2, kind: input, shape index: {}]   ;;  %s3925_s3 = inlined_call_operand.vmem [shape: f32[32,128], index: 3, kind: input, shape index: {}]   ;;  %s3926_s4 = inlined_call_operand.vmem [shape: f32[1,128], index: 4, kind: input, shape index: {}]   ;;  %s3927_s5 = inlined_call_operand.vmem [shape: f32[16,128], index: 5, kind: input, shape index: {}]   ;;  %s3928_s6 = inlined_call_operand.vmem [shape: f32[32,128], index: 6, kind: input, shape index: {}]   ;;  %s3929_s7 = inlined_call_operand.vmem [shape: f32[1,128], index: 7, kind: input, shape index: {}]   ;;  %s3930_s8 = inlined_call_operand.vmem [shape: f32[128,4], index: 8, kind: input, shape index: {}]   ;;  %s3931_s9 = inlined_call_operand.vmem [shape: f32[1,4], index: 9, kind: input, shape index: {}]   ;;  %s3932_s10 = inlined_call_operand.hbm [shape: f32[2,4], index: 10, kind: output, shape index: {}]  }
   0x1   :  { %16 = vsyncpa [#allocation12], 0  ;;  %s3396_s13 = smov 0  }
   0x2 LB: > { %s3402_s14 = sadd.s32 4294967295, %s3322_s13   ;;  %p2566_p0 = scmp.ge.s32.totalorder %s3322_s13, 1  ;;  %s3322_s13 = sphi %s3396_s13, %s22_s13  }
   0x3   : > { %p270_p1 = scmp.lt.s32.totalorder %s3322_s13, 3  ;;  %s3324_s15 = smov [#allocation10]  }
   0x4   : > { %s282_s16 = sshll.u32 %s3324_s15, 4  ;;  %p3933_p4 = scmp.eq.s32.totalorder %s3402_s14, 0  ;;  %s283_s16 = int_to_ptr.vmem [resolvable:$true] %s282_s16 }
   0x5   : > { %p3407_p3 = pnand %p2566_p0, %p270_p1  ;;  %s3254_s21 = scalar_lea.hbm %s3924_s2, 256 }
   0x6   : > { %p3255_p7 = scmp.ne.s32.totalorder %s3924_s2, %s3254_s21  ;;  %p3261_p11 = scmp.lt.u32.totalorder %s3254_s21, %s3924_s2 }
   0x7   : > { %s3935_s17 = scalar_select %p3407_p3, 1, 0 }
   0x8   : > { %p3089_p5 = pneg %p3407_p3 }
   0xa   : > { %p3416_p6 = pnand %p3933_p4, %p3089_p5 }
   0xc   : > { %p3256_p8 = pneg %p3416_p6 }
   0xe   : > { %p3257_p9 = pnand %p3256_p8, %p3255_p7 }
  0x10   : > { %p3258_p10 = pneg %p3257_p9 }
  0x12   : > { %p3263_p12 = pnand %p3261_p11, %p3258_p10 }
  0x14   : > { %3266 = shalt.err (!%p3263_p12)
}
  0x15   : > { %s3267_s26 = scalar_lea.vmem %s283_s16, 256  ;;  %p3275_p5 = scmp.lt.s32.totalorder %s283_s16, %s283_s16 }
  0x16   : > { %p3268_p13 = scmp.ne.s32.totalorder %s283_s16, %s3267_s26  ;;  %p3276_p2 = scmp.lt.s32.totalorder %s3267_s26, %s3267_s26 }
  0x18   : > { %p3270_p0 = pnand %p3268_p13, %p3256_p8  ;;  %p3277_p4 = por %p3276_p2, %p3275_p5 }
  0x1a   : > { %p3271_p1 = pneg %p3270_p0 }
  0x1c   : > { %p3278_p3 = pnand %p3277_p4, %p3271_p1 }
  0x1e   : > { %3281 = shalt.err (!%p3278_p3)
}
  0x1f   : > { %s3325_s27 = smov 128   ;;  %s3326_s28 = smov 8  }
  0x20   : > { %3092 = dma.hbm_to_vmem [thread:$0]  (!%p3416_p6), %s3924_s2, 256, %s283_s16, [#allocation11], %s3325_s27, %s3325_s27, %s3326_s28  }
  0x21   : > { %p3937_p7 = scmp.ne.s32.totalorder %s3935_s17, 0 }
  0x22   : > { %p3938_p9 = scmp.eq.s32.totalorder (!%p3937_p7), %s3402_s14, 0 }
  0x23   : > { %337 = sbr.rel (%p3937_p7) target bundleno = 6210 (0x1842), region = 60 }
  0x2a   : > { %3313 = dma.done.wait (%p3938_p9), [#allocation11], 256   ;;  %p3939_p8 = pmov %p3938_p9 }
  0x2b   : > { %p376_p2 = scmp.lt.s32.totalorder %s3402_s14, 1  ;;  %s381_s11 = ssub.s32 1, %s3402_s14 }
  0x2c   : > { %3315 = vsyncadd (%p3939_p8), [#allocation11], 4294967040  ;;  %p382_p3 = scmp.lt.s32.totalorder %s381_s11, 1  ;;  %p3940_p4 = scmp.ne.s32.totalorder %s3402_s14, 0 }
  0x2d   : > { %s377_s12 = scalar_select %p376_p2, %s3402_s14, 1 }
  0x2e   : > { %s3942_s11 = smov (!%p382_p3, %s381_s11), 1  ;;  %391 = sbr.rel (%p3940_p4) target bundleno = 53 (0x35), region = 68 }
  0x2f   : > { %s2621_s15 = sshll.u32 %s377_s12, 4  ;;  %s2622_s19 = sshll.u32 %s3942_s11, 4  ;;  %vm392_vm0 = vcmask (!%p3940_p4), 254976   ;;  %v3327_v0 = vmov (!%p3940_p4), 0.0   ;;  %v3328_v1 = vmov (!%p3940_p4), -inf  }
  0x30   : > { %s3448_s17 = scalar_lea.vmem %s3922_s0, %s2621_s15  ;;  %s3453_s22 = scalar_lea.vmem %s3923_s1, %s2622_s19  ;;  %393 = vst.msk [vmem:[#allocation2] sm:$0x3] (!%p3940_p4), %vm392_vm0, %v3327_v0  ;;  %394 = vst.msk [vmem:[#allocation3] sm:$0x3] (!%p3940_p4), %vm392_vm0, %v3327_v0 }
  0x31   : > { %395 = vst.msk [vmem:[#allocation4] sm:$0x3] (!%p3940_p4), %vm392_vm0, %v3327_v0  ;;  %396 = vst.msk [vmem:[#allocation5] sm:$0x3] (!%p3940_p4), %vm392_vm0, %v3327_v0 }
  0x32   : > { %397 = vst.msk [vmem:[#allocation6] sm:$0x3] (!%p3940_p4), %vm392_vm0, %v3327_v0  ;;  %398 = vst.msk [vmem:[#allocation8] sm:$0x3] (!%p3940_p4), %vm392_vm0, %v3327_v0 }
  0x33   : > { %399 = vst.msk [vmem:[#allocation7] sm:$0x3] (!%p3940_p4), %vm392_vm0, %v3328_v1  ;;  %400 = vst.msk [vmem:[#allocation9] sm:$0x3] (!%p3940_p4), %vm392_vm0, %v3328_v1 }
  0x35 PF: > { %v405_v2 = vld [vmem:[#allocation10] sm:$0xff]  ;;  %v406_v3 = vld [vmem:[#allocation10 + $0x8] sm:$0xff]  ;;  %v496_v4 = vld [vmem:[%s3927_s5] sm:$0xff]  ;;  %vm414_vm1 = vcmask 130048   ;;  %v3329_v16 = vmov 0.0|0.0   ;;  %vm3331_vm2 = vmmov 0  }
  0x36   : > { %v2953_v5 = vpack.c.bf16 %v406_v3, %v405_v2  ;;  %v497_v6 = vld [vmem:[%s3927_s5 + $0x8] sm:$0xff]  ;;  %v401_v7 = vld [vmem:[%s3448_s17] sm:$0xff]  ;;  %v596_v19 = vld [vmem:[%s3925_s3 + $0x10] sm:$0xff]  ;;  %v3332_v26 = vmov 0.0   ;;  %vm602_vm3 = vcmask 261120   ;;  %s3333_s30 = smov 64  }
  0x37   : > { %v2957_v8 = vpack.c.bf16 %v497_v6, %v496_v4  ;;  %2732 = vmatprep.mubr.msk.f32.mxu0 %vm414_vm1, %v401_v7  ;;  %v403_v9 = vld [vmem:[%s3453_s22] sm:$0xff]  ;;  %v595_v11 = vld [vmem:[%s3925_s3 + $0x8] sm:$0xff]  ;;  %v597_v20 = vld [vmem:[%s3925_s3 + $0x18] sm:$0xff]  ;;  %s3334_s11 = smov 96   ;;  %vm2355_vm4 = vcmask 261126   ;;  %vm2362_vm5 = vcmask 254976  }
  0x38   : > { %v594_v10 = vld [vmem:[%s3925_s3] sm:$0xff]  ;;  %2954 = vmatprep.subr.bf16.mxu0 %v2953_v5  ;;  %2739 = vmatprep.mubr.msk.f32.mxu1 %vm414_vm1, %v403_v9  ;;  %v599_v13 = vld [vmem:[%s3928_s6 + $0x8] sm:$0xff]  ;;  %v600_v21 = vld [vmem:[%s3928_s6 + $0x10] sm:$0xff]  ;;  %v3503_v24 = vpack.c.bf16 %v597_v20, %v596_v19  ;;  %p2614_p6 = scmp.ne.s32.totalorder %s3402_s14, 1 }
  0x39   : > { %v598_v12 = vld [vmem:[%s3928_s6] sm:$0xff]  ;;  %2958 = vmatprep.subr.bf16.mxu1 %v2957_v8  ;;  %2956 = vmatpush3.bf16.msra.mxu0 %v2953_v5  ;;  %v402_v14 = vld [vmem:[%s3448_s17 + $0x8] sm:$0xff]  ;;  %v3480_v15 = vpack.c.bf16 %v595_v11, %v594_v10  ;;  %v601_v22 = vld [vmem:[%s3928_s6 + $0x18] sm:$0xff]  ;;  %s3335_s21 = smov (!%p2614_p6), 32   ;;  %vm3337_vm6 = vmmov (!%p2614_p6), 0   ;;  %s3339_s29 = smov (!%p2614_p6), 64  }
  0x3a   : > { %2960 = vmatpush3.bf16.msra.mxu1 %v2957_v8  ;;  %2961 = vmatprep.subr.bf16.mxu0 %v3329_v16  ;;  %v404_v17 = vld [vmem:[%s3453_s22 + $0x8] sm:$0xff]  ;;  %v3484_v18 = vpack.c.bf16 %v599_v13, %v598_v12  ;;  %v587_v23 = vld [vmem:[#allocation3] sm:$0x3]  ;;  %s3330_s22 = smov 32   ;;  %v3507_v25 = vpack.c.bf16 %v601_v22, %v600_v21  ;;  %v586_v27 = vld [vmem:[#allocation2] sm:$0x3] }
  0x3b   : > { %2967 = vmatprep.subr.bf16.mxu1 %v3329_v16  ;;  %769 = vrot.lane.b32.xlu1 %v587_v23, %s3330_s22  ;;  %v588_v28 = vld [vmem:[#allocation4] sm:$0x3]  ;;  %v2576_v29 = vld [vmem:[%s3926_s4] ss:$0 sm:$0xff]  ;;  %v589_v47 = vld [vmem:[#allocation5] sm:$0x3] }
  0x3c   : > { %2733 = vmatmul.mubr.msk.f32.vlgmr.msra.gmra.mrb[0].mxu0 %vm414_vm1, %v402_v14  ;;  %v2579_v31 = vld [vmem:[%s3929_s7] ss:$0 sm:$0xff]  ;;  %v790_v49 = vrot.slane %v589_v47, 2  ;;  %vm2392_vm7 = vcmask (!%p2614_p6), 523264   ;;  %vm2493_vm8 = vcmask (!%p2614_p6), 25600  }
  0x3d   : > { %2740 = vmatmul.mubr.msk.f32.vlgmr.msra.gmra.mrb[0].mxu1 %vm414_vm1, %v404_v17  ;;  %2963 = vmatpush3.bf16.msra.mxu0 %v3480_v15 }
  0x3e   : > { %2969 = vmatpush3.bf16.msra.mxu1 %v3484_v18  ;;  %2964 = vmatprep.subr.bf16.mxu0 %v3329_v16 }
  0x3f   : > { %2970 = vmatprep.subr.bf16.mxu1 %v3329_v16  ;;  %2750 = vmatprep.mubr.msk.f32.mxu0 %vm3331_vm2, %v3332_v26 }
  0x40   : > { %2761 = vmatprep.mubr.msk.f32.mxu1 %vm3331_vm2, %v3332_v26 }
  0x41   : > { %2966 = vmatpush3.bf16.msra.mxu0 %v3503_v24 }
  0x42   : > { %2972 = vmatpush3.bf16.msra.mxu1 %v3507_v25  ;;  %2973 = vmatprep.subr.bf16.mxu0 %v3329_v16 }
  0x43   : > { %2979 = vmatprep.subr.bf16.mxu1 %v3329_v16 }
  0x44   : > { %2751 = vmatmul.mubr.msk.f32.vlgmr.msra.gmra.mrb[2].mxu0 %vm602_vm3, %v586_v27 }
  0x45   : > { %2762 = vmatmul.mubr.msk.f32.vlgmr.msra.gmra.mrb[2].mxu1 %vm602_vm3, %v588_v28  ;;  %2975 = vmatpush3.bf16.msra.mxu0 %v3480_v15 }
  0x46   : > { %2976 = vmatprep.subr.bf16.mxu0 %v3329_v16  ;;  %2772 = vmatprep.mubr.msk.f32.mxu0 %vm3331_vm2, %v3332_v26 }
  0x47   : > { %2981 = vmatpush3.bf16.msra.mxu1 %v3484_v18  ;;  %2783 = vmatprep.mubr.msk.f32.mxu1 %vm3331_vm2, %v3332_v26 }
  0x48   : > { %2982 = vmatprep.subr.bf16.mxu1 %v3329_v16 }
  0x49   : > { %2978 = vmatpush3.bf16.msra.mxu0 %v3503_v24 }
  0x4a   : > { %2985 = vmatprep.subr.bf16.mxu0 %v3329_v16 }
  0x4b   : > { %2984 = vmatpush3.bf16.msra.mxu1 %v3507_v25 }
  0x4c   : > { %2991 = vmatprep.subr.bf16.mxu1 %v3329_v16 }
  0xad   : > { %v770_v62 = vpop.permute.xlu1 %769 }
 0x10f   : > { %v2734_v30 = vpop.f32.mrb[0].mxu0 }
 0x110   : > { %v3538_v32 = vadd.f32 %v2734_v30, %v2576_v29  ;;  %v487_v33 = vpop.f32.mrb[1].mxu0  ;;  %v2741_v34 = vpop.f32.mrb[0].mxu1 }
 0x111   : > { %v577_v35 = vpop.f32.mrb[1].mxu1  ;;  %v3542_v37 = vadd.f32 %v2576_v29, %v487_v33  ;;  %v3545_v42 = vadd.f32 %v2741_v34, %v2579_v31 }
 0x112   : > { %v3540_v36 = vadd.f32 %v2579_v31, %v577_v35 }
 0x117   : > { %v672_v38 = vpop.f32.mrb[2].mxu0 }
 0x118   : > { %v676_v39 = vadd.f32 %v672_v38, %v3542_v37  ;;  %v746_v40 = vpop.f32.mrb[2].mxu1  ;;  %v2752_v41 = vpop.f32.mrb[3].mxu0 }
 0x119   : > { %v751_v43 = vrot.slane %v746_v40, 2  ;;  %v2763_v44 = vpop.f32.mrb[3].mxu1 }
 0x11a   : > { %3122 = vtanh.f32 %v676_v39  ;;  %v2584_v50 = vmul.f32 -1.442695, %v676_v39 }
 0x11b   : > { %v753_v45 = vadd.f32 %v751_v43, %v3545_v42 }
 0x11d   : > { %3124 = vtanh.f32 %v753_v45  ;;  %v2585_v51 = vmul.f32 -1.442695, %v753_v45 }
 0x11e   : > { %3126 = vpow2.f32 %v2584_v50 }
 0x11f   : > { %3128 = vpow2.f32 %v2585_v51 }
 0x124   : > { %v3123_v46 = vpop.eup %3122 }
 0x125   : > { %774 = vrot.lane.b32.xlu0 %v3123_v46, %s3330_s22 }
 0x127   : > { %v3125_v48 = vpop.eup %3124 }
 0x128   : > { %v3127_v52 = vpop.eup %3126 }
 0x129   : > { %796 = vrot.lane.b32.xlu0 %v3125_v48, %s3330_s22  ;;  %v757_v53 = vadd.f32 1.0, %v3127_v52  ;;  %v3129_v54 = vpop.eup %3128 }
 0x12a   : > { %v764_v55 = vadd.f32 1.0, %v3129_v54 }
 0x12b   : > { %3130 = vrcp.f32 %v757_v53 }
 0x12c   : > { %3132 = vrcp.f32 %v764_v55 }
 0x12d   : > { %791 = vrot.lane.b32.xlu0 %v790_v49, %s3330_s22 }
 0x135   : > { %v3131_v56 = vpop.eup %3130 }
 0x136   : > { %v3133_v59 = vpop.eup %3132  ;;  %v772_v63 = vmul.f32 %v3131_v56, %v770_v62 }
 0x197   : > { %v775_v57 = vpop.permute.xlu0 %774 }
 0x198   : > { %v777_v58 = vmul.f32 %v3131_v56, %v775_v57 }
 0x19a   : > { %779 = vrot.lane.b32.xlu1 %v777_v58, %s3330_s22 }
 0x19b   : > { %v797_v60 = vpop.permute.xlu0 %796 }
 0x19c   : > { %v799_v61 = vmul.f32 %v3133_v59, %v797_v60 }
 0x19e   : > { %801 = vrot.lane.b32.xlu1 %v799_v61, %s3330_s22 }
 0x19f   : > { %v792_v0 = vpop.permute.xlu0 %791 }
 0x1a0   : > { %v794_v3 = vmul.f32 %v3133_v59, %v792_v0 }
 0x20c   : > { %v780_v1 = vpop.permute.xlu1 %779 }
 0x20d   : > { %v3553_v2 = vadd.f32 %v780_v1, %v772_v63 }
 0x20f   : > { %3134 = vtanh.f32 %v3553_v2  ;;  %v991_v47 = vrot.slane %v3553_v2, 6 }
 0x210   : > { %v802_v4 = vpop.permute.xlu1 %801 }
 0x211   : > { %v3556_v5 = vadd.f32 %v802_v4, %v794_v3 }
 0x213   : > { %3136 = vtanh.f32 %v3556_v5  ;;  %v1011_v51 = vrot.slane %v3556_v5, 2 }
 0x219   : > { %v3135_v6 = vpop.eup %3134 }
 0x21a   : > { %785 = vrot.lane.b32.xlu0 %v3135_v6, %s3330_s22 }
 0x21d   : > { %v3137_v7 = vpop.eup %3136 }
 0x21e   : > { %807 = vrot.lane.b32.xlu1 %v3137_v7, %s3330_s22 }
 0x28c   : > { %v786_v8 = vpop.permute.xlu0 %785 }
 0x28d   : > { %v788_v9 = vmul.f32 %v3131_v56, %v786_v8 }
 0x28f   : > { %812 = vrot.lane.b32.xlu0 %v788_v9, %s3333_s30 }
 0x290   : > { %v808_v10 = vpop.permute.xlu1 %807 }
 0x291   : > { %v810_v11 = vmul.f32 %v3133_v59, %v808_v10 }
 0x293   : > { %v818_v12 = vrot.slane %v810_v11, 6 }
 0x295   : > { %819 = vrot.lane.b32.xlu1 %v818_v12, %s3333_s30 }
 0x301   : > { %v3563_v13 = vpop.permute.xlu0 %812 }
 0x302   : > { %2773 = vmatmul.mubr.msk.f32.vlgmr.msra.gmra.mrb[4].mxu0 %vm602_vm3, %v3563_v13 }
 0x303   : > { %2987 = vmatpush3.bf16.msra.mxu0 %v3480_v15  ;;  %2794 = vmatprep.mubr.msk.f32.mxu0 %vm3331_vm2, %v3332_v26 }
 0x304   : > { %2988 = vmatprep.subr.bf16.mxu0 %v3329_v16 }
 0x307   : > { %v3571_v14 = vpop.permute.xlu1 %819  ;;  %2990 = vmatpush3.bf16.msra.mxu0 %v3503_v24 }
 0x308   : > { %2784 = vmatmul.mubr.msk.f32.vlgmr.msra.gmra.mrb[4].mxu1 %vm602_vm3, %v3571_v14  ;;  %2997 = vmatprep.subr.bf16.mxu0 %v3329_v16 }
 0x309   : > { %2993 = vmatpush3.bf16.msra.mxu1 %v3484_v18  ;;  %2805 = vmatprep.mubr.msk.f32.mxu1 %vm3331_vm2, %v3332_v26 }
 0x30a   : > { %2994 = vmatprep.subr.bf16.mxu1 %v3329_v16 }
 0x30d   : > { %2996 = vmatpush3.bf16.msra.mxu1 %v3507_v25 }
 0x30e   : > { %3003 = vmatprep.subr.bf16.mxu1 %v3329_v16 }
 0x3d5   : > { %v892_v17 = vpop.f32.mrb[4].mxu0 }
 0x3d6   : > { %v897_v19 = vrot.slane %v892_v17, 6  ;;  %v2774_v20 = vpop.f32.mrb[5].mxu0 }
 0x3d8   : > { %v899_v21 = vadd.f32 %v897_v19, %v3542_v37 }
 0x3da   : > { %3138 = vtanh.f32 %v899_v21  ;;  %v2588_v31 = vmul.f32 -1.442695, %v899_v21 }
 0x3db   : > { %v968_v22 = vpop.f32.mrb[4].mxu1 }
 0x3dc   : > { %v973_v23 = vrot.slane %v968_v22, 4  ;;  %v2785_v27 = vpop.f32.mrb[5].mxu1 }
 0x3de   : > { %v975_v28 = vadd.f32 %v973_v23, %v3545_v42 }
 0x3e0   : > { %3140 = vtanh.f32 %v975_v28  ;;  %v2589_v33 = vmul.f32 -1.442695, %v975_v28 }
 0x3e1   : > { %3142 = vpow2.f32 %v2588_v31 }
 0x3e2   : > { %3144 = vpow2.f32 %v2589_v33 }
 0x3e4   : > { %v3139_v29 = vpop.eup %3138 }
 0x3e5   : > { %995 = vrot.lane.b32.xlu0 %v3139_v29, %s3330_s22 }
 0x3ea   : > { %v3141_v30 = vpop.eup %3140 }
 0x3eb   : > { %1015 = vrot.lane.b32.xlu1 %v3141_v30, %s3330_s22  ;;  %v3143_v34 = vpop.eup %3142 }
 0x3ec   : > { %v979_v35 = vadd.f32 1.0, %v3143_v34  ;;  %v3145_v38 = vpop.eup %3144 }
 0x3ed   : > { %v986_v39 = vadd.f32 1.0, %v3145_v38 }
 0x3ee   : > { %3146 = vrcp.f32 %v979_v35 }
 0x3ef   : > { %3148 = vrcp.f32 %v986_v39 }
 0x3f8   : > { %v3147_v40 = vpop.eup %3146 }
 0x3f9   : > { %v3149_v44 = vpop.eup %3148  ;;  %v993_v48 = vmul.f32 %v3147_v40, %v991_v47 }
 0x3fa   : > { %v1013_v52 = vmul.f32 %v3149_v44, %v1011_v51 }
 0x457   : > { %v996_v41 = vpop.permute.xlu0 %995 }
 0x458   : > { %v998_v43 = vmul.f32 %v3147_v40, %v996_v41 }
 0x45a   : > { %1000 = vrot.lane.b32.xlu0 %v998_v43, %s3330_s22 }
 0x45d   : > { %v1016_v45 = vpop.permute.xlu1 %1015 }
 0x45e   : > { %v1018_v46 = vmul.f32 %v3149_v44, %v1016_v45 }
 0x460   : > { %1020 = vrot.lane.b32.xlu1 %v1018_v46, %s3330_s22 }
 0x4cc   : > { %v1001_v49 = vpop.permute.xlu0 %1000 }
 0x4cd   : > { %v3590_v50 = vadd.f32 %v1001_v49, %v993_v48 }
 0x4cf   : > { %3150 = vtanh.f32 %v3590_v50  ;;  %v1211_v31 = vrot.slane %v3590_v50, 6 }
 0x4d2   : > { %v1021_v53 = vpop.permute.xlu1 %1020 }
 0x4d3   : > { %v3594_v54 = vadd.f32 %v1021_v53, %v1013_v52 }
 0x4d5   : > { %3152 = vtanh.f32 %v3594_v54  ;;  %v1231_v38 = vrot.slane %v3594_v54, 2 }
 0x4d9   : > { %v3151_v55 = vpop.eup %3150 }
 0x4da   : > { %1006 = vrot.lane.b32.xlu0 %v3151_v55, %s3330_s22 }
 0x4df   : > { %v3153_v56 = vpop.eup %3152 }
 0x4e0   : > { %1026 = vrot.lane.b32.xlu1 %v3153_v56, %s3330_s22 }
 0x54c   : > { %v1007_v57 = vpop.permute.xlu0 %1006 }
 0x54d   : > { %v1009_v58 = vmul.f32 %v3147_v40, %v1007_v57 }
 0x54f   : > { %v1031_v59 = vrot.slane %v1009_v58, 2 }
 0x551   : > { %1032 = vrot.lane.b32.xlu0 %v1031_v59, %s3333_s30 }
 0x552   : > { %v1027_v60 = vpop.permute.xlu1 %1026 }
 0x553   : > { %v1029_v61 = vmul.f32 %v3149_v44, %v1027_v60 }
 0x555   : > { %v1038_v62 = vrot.slane %v1029_v61, 4 }
 0x557   : > { %1039 = vrot.lane.b32.xlu1 %v1038_v62, %s3333_s30 }
 0x5c3   : > { %v3601_v63 = vpop.permute.xlu0 %1032 }
 0x5c4   : > { %2795 = vmatmul.mubr.msk.f32.vlgmr.msra.gmra.mrb[6].mxu0 %vm602_vm3, %v3601_v63 }
 0x5c5   : > { %2999 = vmatpush3.bf16.msra.mxu0 %v3480_v15  ;;  %2816 = vmatprep.mubr.msk.f32.mxu0 %vm3331_vm2, %v3332_v26 }
 0x5c6   : > { %3000 = vmatprep.subr.bf16.mxu0 %v3329_v16 }
 0x5c9   : > { %v3609_v0 = vpop.permute.xlu1 %1039  ;;  %3002 = vmatpush3.bf16.msra.mxu0 %v3503_v24 }
 0x5ca   : > { %2806 = vmatmul.mubr.msk.f32.vlgmr.msra.gmra.mrb[6].mxu1 %vm602_vm3, %v3609_v0  ;;  %3009 = vmatprep.subr.bf16.mxu0 %v3329_v16 }
 0x5cb   : > { %3005 = vmatpush3.bf16.msra.mxu1 %v3484_v18  ;;  %2827 = vmatprep.mubr.msk.f32.mxu1 %vm3331_vm2, %v3332_v26 }
 0x5cc   : > { %3006 = vmatprep.subr.bf16.mxu1 %v3329_v16 }
 0x5cf   : > { %3008 = vmatpush3.bf16.msra.mxu1 %v3507_v25 }
 0x5d0   : > { %3015 = vmatprep.subr.bf16.mxu1 %v3329_v16 }
 0x697   : > { %v1112_v1 = vpop.f32.mrb[6].mxu0 }
 0x698   : > { %v1117_v2 = vrot.slane %v1112_v1, 4  ;;  %v2796_v3 = vpop.f32.mrb[7].mxu0 }
 0x69a   : > { %v1119_v4 = vadd.f32 %v1117_v2, %v3542_v37 }
 0x69c   : > { %3154 = vtanh.f32 %v1119_v4  ;;  %v2592_v11 = vmul.f32 -1.442695, %v1119_v4 }
 0x69d   : > { %v1188_v5 = vpop.f32.mrb[6].mxu1 }
 0x69e   : > { %v1193_v6 = vrot.slane %v1188_v5, 6  ;;  %v2807_v7 = vpop.f32.mrb[7].mxu1 }
 0x6a0   : > { %v1195_v8 = vadd.f32 %v1193_v6, %v3545_v42 }
 0x6a2   : > { %3156 = vtanh.f32 %v1195_v8  ;;  %v2593_v12 = vmul.f32 -1.442695, %v1195_v8 }
 0x6a3   : > { %3158 = vpow2.f32 %v2592_v11 }
 0x6a4   : > { %3160 = vpow2.f32 %v2593_v12 }
 0x6a6   : > { %v3155_v9 = vpop.eup %3154 }
 0x6a7   : > { %1215 = vrot.lane.b32.xlu0 %v3155_v9, %s3330_s22 }
 0x6ac   : > { %v3157_v10 = vpop.eup %3156 }
 0x6ad   : > { %1235 = vrot.lane.b32.xlu1 %v3157_v10, %s3330_s22  ;;  %v3159_v17 = vpop.eup %3158 }
 0x6ae   : > { %v1199_v19 = vadd.f32 1.0, %v3159_v17  ;;  %v3161_v20 = vpop.eup %3160 }
 0x6af   : > { %v1206_v21 = vadd.f32 1.0, %v3161_v20 }
 0x6b0   : > { %3162 = vrcp.f32 %v1199_v19 }
 0x6b1   : > { %3164 = vrcp.f32 %v1206_v21 }
 0x6ba   : > { %v3163_v22 = vpop.eup %3162 }
 0x6bb   : > { %v3165_v28 = vpop.eup %3164  ;;  %v1213_v33 = vmul.f32 %v3163_v22, %v1211_v31 }
 0x6bc   : > { %v1233_v39 = vmul.f32 %v3165_v28, %v1231_v38 }
 0x719   : > { %v1216_v23 = vpop.permute.xlu0 %1215 }
 0x71a   : > { %v1218_v27 = vmul.f32 %v3163_v22, %v1216_v23 }
 0x71c   : > { %1220 = vrot.lane.b32.xlu0 %v1218_v27, %s3330_s22 }
 0x71f   : > { %v1236_v29 = vpop.permute.xlu1 %1235 }
 0x720   : > { %v1238_v30 = vmul.f32 %v3165_v28, %v1236_v29 }
 0x722   : > { %1240 = vrot.lane.b32.xlu1 %v1238_v30, %s3330_s22 }
 0x78e   : > { %v1221_v34 = vpop.permute.xlu0 %1220 }
 0x78f   : > { %v3628_v35 = vadd.f32 %v1221_v34, %v1213_v33 }
 0x791   : > { %3166 = vtanh.f32 %v3628_v35  ;;  %v1428_v10 = vrot.slane %v3628_v35, 6 }
 0x794   : > { %v1241_v40 = vpop.permute.xlu1 %1240 }
 0x795   : > { %v3632_v41 = vadd.f32 %v1241_v40, %v1233_v39 }
 0x797   : > { %3168 = vtanh.f32 %v3632_v41  ;;  %v1448_v17 = vrot.slane %v3632_v41, 2 }
 0x79b   : > { %v3167_v43 = vpop.eup %3166 }
 0x79c   : > { %1226 = vrot.lane.b32.xlu0 %v3167_v43, %s3330_s22 }
 0x7a1   : > { %v3169_v44 = vpop.eup %3168 }
 0x7a2   : > { %1246 = vrot.lane.b32.xlu1 %v3169_v44, %s3330_s22 }
 0x80e   : > { %v1227_v45 = vpop.permute.xlu0 %1226 }
 0x80f   : > { %v1229_v46 = vmul.f32 %v3163_v22, %v1227_v45 }
 0x811   : > { %v1251_v47 = vrot.slane %v1229_v46, 4 }
 0x813   : > { %1252 = vrot.lane.b32.xlu0 %v1251_v47, %s3333_s30 }
 0x814   : > { %v1247_v48 = vpop.permute.xlu1 %1246 }
 0x815   : > { %v1249_v49 = vmul.f32 %v3165_v28, %v1247_v48 }
 0x817   : > { %v1258_v50 = vrot.slane %v1249_v49, 2 }
 0x819   : > { %1259 = vrot.lane.b32.xlu1 %v1258_v50, %s3333_s30 }
 0x885   : > { %v3639_v51 = vpop.permute.xlu0 %1252 }
 0x886   : > { %2817 = vmatmul.mubr.msk.f32.vlgmr.msra.gmra.mrb[8].mxu0 %vm602_vm3, %v3639_v51 }
 0x887   : > { %3011 = vmatpush3.bf16.msra.mxu0 %v3480_v15  ;;  %2838 = vmatprep.mubr.msk.f32.mxu0 %vm3331_vm2, %v3332_v26 }
 0x888   : > { %3012 = vmatprep.subr.bf16.mxu0 %v3329_v16 }
 0x88b   : > { %v3647_v52 = vpop.permute.xlu1 %1259  ;;  %3014 = vmatpush3.bf16.msra.mxu0 %v3503_v24 }
 0x88c   : > { %2828 = vmatmul.mubr.msk.f32.vlgmr.msra.gmra.mrb[8].mxu1 %vm602_vm3, %v3647_v52  ;;  %3021 = vmatprep.subr.bf16.mxu0 %v3329_v16 }
 0x88d   : > { %3017 = vmatpush3.bf16.msra.mxu1 %v3484_v18  ;;  %2849 = vmatprep.mubr.msk.f32.mxu1 %vm3331_vm2, %v3332_v26 }
 0x88e   : > { %3018 = vmatprep.subr.bf16.mxu1 %v3329_v16 }
 0x891   : > { %3020 = vmatpush3.bf16.msra.mxu1 %v3507_v25 }
 0x892   : > { %3027 = vmatprep.subr.bf16.mxu1 %v3329_v16 }
 0x959   : > { %v1332_v53 = vpop.f32.mrb[8].mxu0 }
 0x95a   : > { %v1337_v54 = vrot.slane %v1332_v53, 2  ;;  %v2818_v55 = vpop.f32.mrb[9].mxu0 }
 0x95c   : > { %v1339_v56 = vadd.f32 %v1337_v54, %v3542_v37 }
 0x95e   : > { %3170 = vtanh.f32 %v1339_v56  ;;  %v2596_v62 = vmul.f32 -1.442695, %v1339_v56 }
 0x95f   : > { %v1408_v57 = vpop.f32.mrb[8].mxu1 }
 0x960   : > { %v1412_v58 = vadd.f32 %v1408_v57, %v3545_v42  ;;  %v2829_v59 = vpop.f32.mrb[9].mxu1 }
 0x962   : > { %3172 = vtanh.f32 %v1412_v58  ;;  %v2597_v1 = vmul.f32 -1.442695, %v1412_v58 }
 0x963   : > { %3174 = vpow2.f32 %v2596_v62 }
 0x964   : > { %3176 = vpow2.f32 %v2597_v1 }
 0x968   : > { %v3171_v60 = vpop.eup %3170 }
 0x969   : > { %1432 = vrot.lane.b32.xlu0 %v3171_v60, %s3330_s22 }
 0x96c   : > { %v3173_v61 = vpop.eup %3172 }
 0x96d   : > { %1452 = vrot.lane.b32.xlu1 %v3173_v61, %s3330_s22  ;;  %v3175_v2 = vpop.eup %3174 }
 0x96e   : > { %v1416_v3 = vadd.f32 1.0, %v3175_v2  ;;  %v3177_v4 = vpop.eup %3176 }
 0x96f   : > { %v1423_v37 = vadd.f32 1.0, %v3177_v4 }
 0x970   : > { %3178 = vrcp.f32 %v1416_v3 }
 0x971   : > { %3180 = vrcp.f32 %v1423_v37 }
 0x97a   : > { %v3179_v5 = vpop.eup %3178 }
 0x97b   : > { %v3181_v7 = vpop.eup %3180  ;;  %v1430_v11 = vmul.f32 %v3179_v5, %v1428_v10 }
 0x97c   : > { %v1450_v20 = vmul.f32 %v3181_v7, %v1448_v17 }
 0x9db   : > { %v1433_v42 = vpop.permute.xlu0 %1432 }
 0x9dc   : > { %v1435_v6 = vmul.f32 %v3179_v5, %v1433_v42 }
 0x9de   : > { %1437 = vrot.lane.b32.xlu0 %v1435_v6, %s3330_s22 }
 0x9df   : > { %v1453_v8 = vpop.permute.xlu1 %1452 }
 0x9e0   : > { %v1455_v9 = vmul.f32 %v3181_v7, %v1453_v8 }
 0x9e2   : > { %1457 = vrot.lane.b32.xlu1 %v1455_v9, %s3330_s22 }
 0xa50   : > { %v1438_v12 = vpop.permute.xlu0 %1437 }
 0xa51   : > { %v3667_v19 = vadd.f32 %v1438_v12, %v1430_v11 }
 0xa53   : > { %3182 = vtanh.f32 %v3667_v19  ;;  %v1644_v62 = vrot.slane %v3667_v19, 6 }
 0xa54   : > { %v1458_v21 = vpop.permute.xlu1 %1457 }
 0xa55   : > { %v3670_v22 = vadd.f32 %v1458_v21, %v1450_v20 }
 0xa57   : > { %3184 = vtanh.f32 %v3670_v22  ;;  %v1664_v3 = vrot.slane %v3670_v22, 2 }
 0xa5d   : > { %v3183_v23 = vpop.eup %3182 }
 0xa5e   : > { %1443 = vrot.lane.b32.xlu0 %v3183_v23, %s3330_s22 }
 0xa61   : > { %v3185_v27 = vpop.eup %3184 }
 0xa62   : > { %1463 = vrot.lane.b32.xlu1 %v3185_v27, %s3330_s22 }
 0xad0   : > { %v1444_v28 = vpop.permute.xlu0 %1443 }
 0xad1   : > { %v1446_v29 = vmul.f32 %v3179_v5, %v1444_v28 }
 0xad3   : > { %v1468_v30 = vrot.slane %v1446_v29, 6 }
 0xad4   : > { %v1464_v31 = vpop.permute.xlu1 %1463 }
 0xad5   : > { %v1466_v33 = vmul.f32 %v3181_v7, %v1464_v31  ;;  %1469 = vrot.lane.b32.xlu0 %v1468_v30, %s3333_s30 }
 0xad7   : > { %1475 = vrot.lane.b32.xlu1 %v1466_v33, %s3333_s30 }
 0xb47   : > { %v3677_v34 = vpop.permute.xlu0 %1469 }
 0xb48   : > { %2839 = vmatmul.mubr.msk.f32.vlgmr.msra.gmra.mrb[10].mxu0 %vm602_vm3, %v3677_v34 }
 0xb49   : > { %v3681_v35 = vpop.permute.xlu1 %1475  ;;  %3023 = vmatpush3.bf16.msra.mxu0 %v3480_v15  ;;  %2860 = vmatprep.mubr.msk.f32.mxu0 %vm3331_vm2, %v3332_v26 }
 0xb4a   : > { %2850 = vmatmul.mubr.msk.f32.vlgmr.msra.gmra.mrb[10].mxu1 %vm602_vm3, %v3681_v35  ;;  %3024 = vmatprep.subr.bf16.mxu0 %v3329_v16 }
 0xb4b   : > { %3029 = vmatpush3.bf16.msra.mxu1 %v3484_v18  ;;  %2871 = vmatprep.mubr.msk.f32.mxu1 %vm3331_vm2, %v3332_v26 }
 0xb4c   : > { %3030 = vmatprep.subr.bf16.mxu1 %v3329_v16 }
 0xb4d   : > { %3026 = vmatpush3.bf16.msra.mxu0 %v3503_v24 }
 0xb4e   : > { %3033 = vmatprep.subr.bf16.mxu0 %v3329_v16 }
 0xb4f   : > { %3032 = vmatpush3.bf16.msra.mxu1 %v3507_v25 }
 0xb50   : > { %3039 = vmatprep.subr.bf16.mxu1 %v3329_v16 }
 0xc1b   : > { %v1548_v38 = vpop.f32.mrb[10].mxu0 }
 0xc1c   : > { %v1552_v39 = vadd.f32 %v1548_v38, %v3538_v32  ;;  %v2840_v40 = vpop.f32.mrb[11].mxu0 }
 0xc1d   : > { %v1621_v41 = vpop.f32.mrb[10].mxu1 }
 0xc1e   : > { %3186 = vtanh.f32 %v1552_v39  ;;  %v1626_v43 = vrot.slane %v1621_v41, 2  ;;  %v2851_v44 = vpop.f32.mrb[11].mxu1  ;;  %v2600_v48 = vmul.f32 -1.442695, %v1552_v39 }
 0xc20   : > { %v1628_v45 = vadd.f32 %v1626_v43, %v3540_v36 }
 0xc22   : > { %3188 = vtanh.f32 %v1628_v45  ;;  %v2601_v49 = vmul.f32 -1.442695, %v1628_v45 }
 0xc23   : > { %3190 = vpow2.f32 %v2600_v48 }
 0xc24   : > { %3192 = vpow2.f32 %v2601_v49 }
 0xc28   : > { %v3187_v46 = vpop.eup %3186 }
 0xc29   : > { %1648 = vrot.lane.b32.xlu0 %v3187_v46, %s3330_s22 }
 0xc2c   : > { %v3189_v47 = vpop.eup %3188 }
 0xc2d   : > { %1668 = vrot.lane.b32.xlu1 %v3189_v47, %s3330_s22  ;;  %v3191_v50 = vpop.eup %3190 }
 0xc2e   : > { %v1632_v53 = vadd.f32 1.0, %v3191_v50  ;;  %v3193_v54 = vpop.eup %3192 }
 0xc2f   : > { %v1639_v55 = vadd.f32 1.0, %v3193_v54 }
 0xc30   : > { %3194 = vrcp.f32 %v1632_v53 }
 0xc31   : > { %3196 = vrcp.f32 %v1639_v55 }
 0xc3a   : > { %v3195_v56 = vpop.eup %3194 }
 0xc3b   : > { %v3197_v59 = vpop.eup %3196  ;;  %v1646_v1 = vmul.f32 %v3195_v56, %v1644_v62 }
 0xc3c   : > { %v1666_v37 = vmul.f32 %v3197_v59, %v1664_v3 }
 0xc9b   : > { %v1649_v57 = vpop.permute.xlu0 %1648 }
 0xc9c   : > { %v1651_v58 = vmul.f32 %v3195_v56, %v1649_v57 }
 0xc9e   : > { %1653 = vrot.lane.b32.xlu0 %v1651_v58, %s3330_s22 }
 0xc9f   : > { %v1669_v60 = vpop.permute.xlu1 %1668 }
 0xca0   : > { %v1671_v61 = vmul.f32 %v3197_v59, %v1669_v60 }
 0xca2   : > { %1673 = vrot.lane.b32.xlu1 %v1671_v61, %s3330_s22 }
 0xd10   : > { %v1654_v2 = vpop.permute.xlu0 %1653 }
 0xd11   : > { %v3705_v4 = vadd.f32 %v1654_v2, %v1646_v1 }
 0xd13   : > { %3198 = vtanh.f32 %v3705_v4  ;;  %v1863_v53 = vrot.slane %v3705_v4, 6 }
 0xd14   : > { %v1674_v5 = vpop.permute.xlu1 %1673 }
 0xd15   : > { %v3708_v42 = vadd.f32 %v1674_v5, %v1666_v37 }
 0xd17   : > { %3200 = vtanh.f32 %v3708_v42  ;;  %v1883_v57 = vrot.slane %v3708_v42, 2 }
 0xd1d   : > { %v3199_v6 = vpop.eup %3198 }
 0xd1e   : > { %1659 = vrot.lane.b32.xlu0 %v3199_v6, %s3330_s22 }
 0xd21   : > { %v3201_v7 = vpop.eup %3200 }
 0xd22   : > { %1679 = vrot.lane.b32.xlu1 %v3201_v7, %s3330_s22 }
 0xd90   : > { %v1660_v8 = vpop.permute.xlu0 %1659 }
 0xd91   : > { %v1662_v9 = vmul.f32 %v3195_v56, %v1660_v8 }
 0xd93   : > { %1684 = vrot.lane.b32.xlu0 %v1662_v9, %s3333_s30 }
 0xd94   : > { %v1680_v10 = vpop.permute.xlu1 %1679 }
 0xd95   : > { %v1682_v11 = vmul.f32 %v3197_v59, %v1680_v10 }
 0xd97   : > { %v1690_v12 = vrot.slane %v1682_v11, 6 }
 0xd99   : > { %1691 = vrot.lane.b32.xlu1 %v1690_v12, %s3333_s30 }
 0xe05   : > { %v3715_v17 = vpop.permute.xlu0 %1684 }
 0xe06   : > { %2861 = vmatmul.mubr.msk.f32.vlgmr.msra.gmra.mrb[12].mxu0 %vm602_vm3, %v3715_v17 }
 0xe07   : > { %3035 = vmatpush3.bf16.msra.mxu0 %v3480_v15  ;;  %2882 = vmatprep.mubr.msk.f32.mxu0 %vm3331_vm2, %v3332_v26 }
 0xe08   : > { %3036 = vmatprep.subr.bf16.mxu0 %v3329_v16 }
 0xe0b   : > { %v3723_v19 = vpop.permute.xlu1 %1691  ;;  %3038 = vmatpush3.bf16.msra.mxu0 %v3503_v24 }
 0xe0c   : > { %2872 = vmatmul.mubr.msk.f32.vlgmr.msra.gmra.mrb[12].mxu1 %vm602_vm3, %v3723_v19  ;;  %3045 = vmatprep.subr.bf16.mxu0 %v3329_v16 }
 0xe0d   : > { %3041 = vmatpush3.bf16.msra.mxu1 %v3484_v18  ;;  %2893 = vmatprep.mubr.msk.f32.mxu1 %vm3331_vm2, %v3332_v26 }
 0xe0e   : > { %3042 = vmatprep.subr.bf16.mxu1 %v3329_v16 }
 0xe11   : > { %3044 = vmatpush3.bf16.msra.mxu1 %v3507_v25 }
 0xe12   : > { %3051 = vmatprep.subr.bf16.mxu1 %v3329_v16 }
 0xed9   : > { %v1764_v20 = vpop.f32.mrb[12].mxu0 }
 0xeda   : > { %v1769_v21 = vrot.slane %v1764_v20, 6  ;;  %v2862_v22 = vpop.f32.mrb[13].mxu0 }
 0xedc   : > { %v1771_v23 = vadd.f32 %v1769_v21, %v3538_v32 }
 0xede   : > { %3202 = vtanh.f32 %v1771_v23  ;;  %v2604_v38 = vmul.f32 -1.442695, %v1771_v23 }
 0xedf   : > { %v1840_v27 = vpop.f32.mrb[12].mxu1 }
 0xee0   : > { %v1845_v28 = vrot.slane %v1840_v27, 4  ;;  %v2873_v29 = vpop.f32.mrb[13].mxu1 }
 0xee2   : > { %v1847_v30 = vadd.f32 %v1845_v28, %v3540_v36 }
 0xee4   : > { %3204 = vtanh.f32 %v1847_v30  ;;  %v2605_v39 = vmul.f32 -1.442695, %v1847_v30 }
 0xee5   : > { %3206 = vpow2.f32 %v2604_v38 }
 0xee6   : > { %3208 = vpow2.f32 %v2605_v39 }
 0xee8   : > { %v3203_v31 = vpop.eup %3202 }
 0xee9   : > { %1867 = vrot.lane.b32.xlu0 %v3203_v31, %s3330_s22 }
 0xeee   : > { %v3205_v33 = vpop.eup %3204 }
 0xeef   : > { %1887 = vrot.lane.b32.xlu1 %v3205_v33, %s3330_s22  ;;  %v3207_v40 = vpop.eup %3206 }
 0xef0   : > { %v1851_v41 = vadd.f32 1.0, %v3207_v40  ;;  %v3209_v43 = vpop.eup %3208 }
 0xef1   : > { %v1858_v44 = vadd.f32 1.0, %v3209_v43 }
 0xef2   : > { %3210 = vrcp.f32 %v1851_v41 }
 0xef3   : > { %3212 = vrcp.f32 %v1858_v44 }
 0xefc   : > { %v3211_v45 = vpop.eup %3210 }
 0xefd   : > { %v3213_v48 = vpop.eup %3212  ;;  %v1865_v54 = vmul.f32 %v3211_v45, %v1863_v53 }
 0xefe   : > { %v1885_v58 = vmul.f32 %v3213_v48, %v1883_v57 }
 0xf5b   : > { %v1868_v46 = vpop.permute.xlu0 %1867 }
 0xf5c   : > { %v1870_v47 = vmul.f32 %v3211_v45, %v1868_v46 }
 0xf5e   : > { %1872 = vrot.lane.b32.xlu0 %v1870_v47, %s3330_s22 }
 0xf61   : > { %v1888_v49 = vpop.permute.xlu1 %1887 }
 0xf62   : > { %v1890_v50 = vmul.f32 %v3213_v48, %v1888_v49 }
 0xf64   : > { %1892 = vrot.lane.b32.xlu1 %v1890_v50, %s3330_s22 }
 0xfd0   : > { %v1873_v55 = vpop.permute.xlu0 %1872 }
 0xfd1   : > { %v3742_v56 = vadd.f32 %v1873_v55, %v1865_v54 }
 0xfd3   : > { %3214 = vtanh.f32 %v3742_v56  ;;  %v2083_v38 = vrot.slane %v3742_v56, 6 }
 0xfd6   : > { %v1893_v59 = vpop.permute.xlu1 %1892 }
 0xfd7   : > { %v3746_v60 = vadd.f32 %v1893_v59, %v1885_v58 }
 0xfd9   : > { %3216 = vtanh.f32 %v3746_v60  ;;  %v2103_v43 = vrot.slane %v3746_v60, 2 }
 0xfdd   : > { %v3215_v61 = vpop.eup %3214 }
 0xfde   : > { %1878 = vrot.lane.b32.xlu0 %v3215_v61, %s3330_s22 }
 0xfe3   : > { %v3217_v62 = vpop.eup %3216 }
 0xfe4   : > { %1898 = vrot.lane.b32.xlu1 %v3217_v62, %s3330_s22 }
0x1050   : > { %v1879_v1 = vpop.permute.xlu0 %1878 }
0x1051   : > { %v1881_v2 = vmul.f32 %v3211_v45, %v1879_v1 }
0x1053   : > { %v1903_v3 = vrot.slane %v1881_v2, 2 }
0x1055   : > { %1904 = vrot.lane.b32.xlu0 %v1903_v3, %s3333_s30 }
0x1056   : > { %v1899_v4 = vpop.permute.xlu1 %1898 }
0x1057   : > { %v1901_v37 = vmul.f32 %v3213_v48, %v1899_v4 }
0x1059   : > { %v1910_v5 = vrot.slane %v1901_v37, 4 }
0x105b   : > { %1911 = vrot.lane.b32.xlu1 %v1910_v5, %s3333_s30 }
0x10c7   : > { %v3753_v42 = vpop.permute.xlu0 %1904 }
0x10c8   : > { %2883 = vmatmul.mubr.msk.f32.vlgmr.msra.gmra.mrb[14].mxu0 %vm602_vm3, %v3753_v42 }
0x10c9   : > { %3047 = vmatpush3.bf16.msra.mxu0 %v3480_v15  ;;  %2904 = vmatprep.mubr.msk.f32.mxu0 %vm3331_vm2, %v3332_v26 }
0x10ca   : > { %3048 = vmatprep.subr.bf16.mxu0 %v3329_v16 }
0x10cd   : > { %v3761_v6 = vpop.permute.xlu1 %1911  ;;  %3050 = vmatpush3.bf16.msra.mxu0 %v3503_v24 }
0x10ce   : > { %2894 = vmatmul.mubr.msk.f32.vlgmr.msra.gmra.mrb[14].mxu1 %vm602_vm3, %v3761_v6 }
0x10cf   : > { %3053 = vmatpush3.bf16.msra.mxu1 %v3484_v18  ;;  %2915 = vmatprep.mubr.msk.f32.mxu1 %vm3331_vm2, %v3332_v26 }
0x10d0   : > { %3054 = vmatprep.subr.bf16.mxu1 %v3329_v16 }
0x10d3   : > { %3056 = vmatpush3.bf16.msra.mxu1 %v3507_v25 }
0x119b   : > { %v1984_v15 = vpop.f32.mrb[14].mxu0 }
0x119c   : > { %v1989_v7 = vrot.slane %v1984_v15, 4  ;;  %v2884_v8 = vpop.f32.mrb[15].mxu0 }
0x119e   : > { %v1991_v9 = vadd.f32 %v1989_v7, %v3538_v32 }
0x11a0   : > { %3218 = vtanh.f32 %v1991_v9  ;;  %v2608_v16 = vmul.f32 -1.442695, %v1991_v9 }
0x11a1   : > { %v2060_v10 = vpop.f32.mrb[14].mxu1 }
0x11a2   : > { %v2065_v24 = vrot.slane %v2060_v10, 6  ;;  %v2895_v11 = vpop.f32.mrb[15].mxu1 }
0x11a4   : > { %v2067_v12 = vadd.f32 %v2065_v24, %v3540_v36 }
0x11a6   : > { %3220 = vtanh.f32 %v2067_v12  ;;  %v2609_v25 = vmul.f32 -1.442695, %v2067_v12 }
0x11a7   : > { %3222 = vpow2.f32 %v2608_v16 }
0x11a8   : > { %3224 = vpow2.f32 %v2609_v25 }
0x11aa   : > { %v3219_v18 = vpop.eup %3218 }
0x11ab   : > { %2087 = vrot.lane.b32.xlu0 %v3219_v18, %s3330_s22 }
0x11b0   : > { %v3221_v26 = vpop.eup %3220 }
0x11b1   : > { %2107 = vrot.lane.b32.xlu1 %v3221_v26, %s3330_s22  ;;  %v3223_v20 = vpop.eup %3222 }
0x11b2   : > { %v2071_v21 = vadd.f32 1.0, %v3223_v20  ;;  %v3225_v22 = vpop.eup %3224 }
0x11b3   : > { %v2078_v23 = vadd.f32 1.0, %v3225_v22 }
0x11b4   : > { %3226 = vrcp.f32 %v2071_v21 }
0x11b5   : > { %3228 = vrcp.f32 %v2078_v23 }
0x11be   : > { %v3227_v27 = vpop.eup %3226 }
0x11bf   : > { %v3229_v30 = vpop.eup %3228  ;;  %v2085_v39 = vmul.f32 %v3227_v27, %v2083_v38 }
0x11c0   : > { %v2105_v44 = vmul.f32 %v3229_v30, %v2103_v43  ;;  %v592_v43 = vld [vmem:[#allocation8] sm:$0x3] }
0x121d   : > { %v2088_v28 = vpop.permute.xlu0 %2087 }
0x121e   : > { %v2090_v29 = vmul.f32 %v3227_v27, %v2088_v28 }
0x1220   : > { %2092 = vrot.lane.b32.xlu0 %v2090_v29, %s3330_s22 }
0x1223   : > { %v2108_v31 = vpop.permute.xlu1 %2107 }
0x1224   : > { %v2110_v33 = vmul.f32 %v3229_v30, %v2108_v31 }
0x1226   : > { %2112 = vrot.lane.b32.xlu1 %v2110_v33, %s3330_s22 }
0x1292   : > { %v2093_v40 = vpop.permute.xlu0 %2092 }
0x1293   : > { %v2095_v41 = vadd.f32 %v2093_v40, %v2085_v39  ;;  %v590_v40 = vld [vmem:[#allocation6] sm:$0x3] }
0x1295   : > { %3230 = vtanh.f32 %v2095_v41  ;;  %v2300_v26 = vrot.slane %v2095_v41, 6  ;;  %v591_v41 = vld [vmem:[#allocation7] sm:$0x3] }
0x1298   : > { %v2113_v45 = vpop.permute.xlu1 %2112 }
0x1299   : > { %v2115_v46 = vadd.f32 %v2113_v45, %v2105_v44  ;;  %v593_v44 = vld [vmem:[#allocation9] sm:$0x3]  ;;  %v815_v45 = vadd.f32 %v3563_v13, %v590_v40  ;;  %v2409_v40 = vld [vmem:[%s3930_s8 + $0x78] sm:$0xff] (!%p2614_p6) }
0x129b   : > { %3232 = vtanh.f32 %v2115_v46  ;;  %v2320_v20 = vrot.slane %v2115_v46, 2  ;;  %v816_v46 = vmax.f32 %v591_v41, %v3563_v13 }
0x129f   : > { %v3231_v47 = vpop.eup %3230 }
0x12a0   : > { %2098 = vrot.lane.b32.xlu0 %v3231_v47, %s3330_s22  ;;  %v822_v47 = vadd.f32 %v3571_v14, %v592_v43  ;;  %v3338_v43 = vmov (!%p2614_p6), 0.0  }
0x12a5   : > { %v3233_v48 = vpop.eup %3232 }
0x12a6   : > { %2118 = vrot.lane.b32.xlu1 %v3233_v48, %s3330_s22  ;;  %v823_v48 = vmax.f32 %v593_v44, %v3571_v14 }
0x1312   : > { %v2099_v49 = vpop.permute.xlu0 %2098 }
0x1313   : > { %v2101_v50 = vmul.f32 %v3227_v27, %v2099_v49  ;;  %v1035_v49 = vadd.f32 %v3601_v63, %v815_v45 }
0x1315   : > { %v2123_v53 = vrot.slane %v2101_v50, 4  ;;  %v1036_v50 = vmax.f32 %v816_v46, %v3601_v63 }
0x1317   : > { %2124 = vrot.lane.b32.xlu0 %v2123_v53, %s3333_s30  ;;  %v1042_v53 = vadd.f32 %v3609_v0, %v822_v47 }
0x1318   : > { %v2119_v54 = vpop.permute.xlu1 %2118 }
0x1319   : > { %v2121_v55 = vmul.f32 %v3229_v30, %v2119_v54  ;;  %v1043_v54 = vmax.f32 %v823_v48, %v3609_v0 }
0x131b   : > { %v2130_v56 = vrot.slane %v2121_v55, 2  ;;  %v1255_v55 = vadd.f32 %v3639_v51, %v1035_v49  ;;  %v1263_v13 = vmax.f32 %v1043_v54, %v3647_v52 }
0x131d   : > { %2131 = vrot.lane.b32.xlu1 %v2130_v56, %s3333_s30  ;;  %v1256_v56 = vmax.f32 %v1036_v50, %v3639_v51  ;;  %v1479_v63 = vmax.f32 %v1263_v13, %v3681_v35 }
0x131f   : > { %v1473_v14 = vmax.f32 %v1256_v56, %v3677_v34  ;;  %v1695_v51 = vmax.f32 %v1479_v63, %v3723_v19 }
0x1321   : > { %v1688_v0 = vmax.f32 %v1473_v14, %v3715_v17 }
0x1389   : > { %v3783_v57 = vpop.permute.xlu0 %2124 }
0x138a   : > { %2905 = vmatmul.mubr.msk.f32.vlgmr.msra.gmra.mrb[16].mxu0 %vm602_vm3, %v3783_v57 }
0x138b   : > { %2950 = vmatprep.mubr.msk.f32.mxu0 (!%p2614_p6), %vm3337_vm6, %v3338_v43 }
0x138f   : > { %v3787_v58 = vpop.permute.xlu1 %2131 }
0x1390   : > { %2916 = vmatmul.mubr.msk.f32.vlgmr.msra.gmra.mrb[16].mxu1 %vm602_vm3, %v3787_v58 }
0x145d   : > { %v2204_v59 = vpop.f32.mrb[16].mxu0 }
0x145e   : > { %v2209_v60 = vrot.slane %v2204_v59, 2  ;;  %v2906_v61 = vpop.f32.mrb[17].mxu0  ;;  %v1262_v59 = vadd.f32 %v3647_v52, %v1042_v53  ;;  %v2615_v53 = vld [vmem:[%s3931_s9] ss:$0 sm:$0xff] (!%p2614_p6) }
0x1460   : > { %v2211_v62 = vadd.f32 %v2209_v60, %v3538_v32  ;;  %v1472_v60 = vadd.f32 %v3677_v34, %v1255_v55  ;;  %v1478_v61 = vadd.f32 %v3681_v35, %v1262_v59 }
0x1462   : > { %3234 = vtanh.f32 %v2211_v62  ;;  %v2612_v5 = vmul.f32 -1.442695, %v2211_v62  ;;  %v1687_v62 = vadd.f32 %v3715_v17, %v1472_v60 }
0x1463   : > { %v2280_v1 = vpop.f32.mrb[16].mxu1 }
0x1464   : > { %v2284_v2 = vadd.f32 %v2280_v1, %v3540_v36  ;;  %v2917_v3 = vpop.f32.mrb[17].mxu1  ;;  %v1694_v1 = vadd.f32 %v3723_v19, %v1478_v61  ;;  %v1907_v52 = vadd.f32 %v3753_v42, %v1687_v62 }
0x1465   : > { %v1908_v3 = vmax.f32 %v1688_v0, %v3753_v42 }
0x1466   : > { %3236 = vtanh.f32 %v2284_v2  ;;  %v2613_v15 = vmul.f32 -1.442695, %v2284_v2  ;;  %v1914_v34 = vadd.f32 %v3761_v6, %v1694_v1  ;;  %v2127_v35 = vadd.f32 %v3783_v57, %v1907_v52 }
0x1467   : > { %3238 = vpow2.f32 %v2612_v5  ;;  %v2128_v17 = vmax.f32 %v1908_v3, %v3783_v57 }
0x1468   : > { %3240 = vpow2.f32 %v2613_v15 }
0x146c   : > { %v3235_v4 = vpop.eup %3234 }
0x146d   : > { %2304 = vrot.lane.b32.xlu0 %v3235_v4, %s3330_s22  ;;  %v1915_v4 = vmax.f32 %v1695_v51, %v3761_v6 }
0x146f   : > { %v2135_v19 = vmax.f32 %v1915_v4, %v3787_v58 }
0x1470   : > { %v3237_v37 = vpop.eup %3236 }
0x1471   : > { %2324 = vrot.lane.b32.xlu1 %v3237_v37, %s3330_s22  ;;  %v3239_v7 = vpop.eup %3238  ;;  %v2134_v37 = vadd.f32 %v3787_v58, %v1914_v34 }
0x1472   : > { %v2288_v8 = vadd.f32 1.0, %v3239_v7  ;;  %v3241_v9 = vpop.eup %3240 }
0x1473   : > { %v2295_v32 = vadd.f32 1.0, %v3241_v9  ;;  %v2394_v9 = vld [vmem:[%s3930_s8] sm:$0xff] (!%p2614_p6) }
0x1474   : > { %3242 = vrcp.f32 %v2288_v8 }
0x1475   : > { %3244 = vrcp.f32 %v2295_v32  ;;  %v2395_v32 = vld [vmem:[%s3930_s8 + $0x8] sm:$0xff] (!%p2614_p6) }
0x147e   : > { %v3243_v10 = vpop.eup %3242 }
0x147f   : > { %v3245_v11 = vpop.eup %3244  ;;  %v2302_v16 = vmul.f32 %v3243_v10, %v2300_v26  ;;  %v2399_v26 = vld [vmem:[%s3930_s8 + $0x28] sm:$0xff] (!%p2614_p6) }
0x1480   : > { %v2322_v22 = vmul.f32 %v3245_v11, %v2320_v20  ;;  %v2401_v20 = vld [vmem:[%s3930_s8 + $0x38] sm:$0xff] (!%p2614_p6) }
0x14df   : > { %v2305_v36 = vpop.permute.xlu0 %2304 }
0x14e0   : > { %v2307_v24 = vmul.f32 %v3243_v10, %v2305_v36  ;;  %v3336_v36 = vmov (!%p2614_p6), 0.0|0.0  }
0x14e1   : > { %3057 = vmatprep.subr.bf16.mxu0 (!%p2614_p6), %v3336_v36 }
0x14e2   : > { %2309 = vrot.lane.b32.xlu0 %v2307_v24, %s3330_s22  ;;  %v3058_v24 = vpack.c.bf16 (!%p2614_p6), %v2395_v32, %v2394_v9 }
0x14e3   : > { %v2325_v12 = vpop.permute.xlu1 %2324 }
0x14e4   : > { %v2327_v18 = vmul.f32 %v3245_v11, %v2325_v12  ;;  %3059 = vmatpush3.bf16.msra.mxu0 (!%p2614_p6), %v3058_v24 }
0x14e5   : > { %3060 = vmatprep.subr.bf16.mxu0 (!%p2614_p6), %v3336_v36 }
0x14e6   : > { %2329 = vrot.lane.b32.xlu1 %v2327_v18, %s3330_s22  ;;  %v2398_v18 = vld [vmem:[%s3930_s8 + $0x20] sm:$0xff] (!%p2614_p6) }
0x1554   : > { %v2310_v25 = vpop.permute.xlu0 %2309 }
0x1555   : > { %v2312_v21 = vadd.f32 %v2310_v25, %v2302_v16  ;;  %v3064_v16 = vpack.c.bf16 (!%p2614_p6), %v2399_v26, %v2398_v18  ;;  %v2400_v25 = vld [vmem:[%s3930_s8 + $0x30] sm:$0xff] (!%p2614_p6) }
0x1557   : > { %3246 = vtanh.f32 %v2312_v21 }
0x1558   : > { %v2330_v23 = vpop.permute.xlu1 %2329 }
0x1559   : > { %v2332_v27 = vadd.f32 %v2330_v23, %v2322_v22  ;;  %v2402_v22 = vld [vmem:[%s3930_s8 + $0x40] sm:$0xff] (!%p2614_p6)  ;;  %v2403_v23 = vld [vmem:[%s3930_s8 + $0x48] sm:$0xff] (!%p2614_p6) }
0x155b   : > { %3248 = vtanh.f32 %v2332_v27 }
0x1561   : > { %v3247_v28 = vpop.eup %3246 }
0x1562   : > { %2315 = vrot.lane.b32.xlu0 %v3247_v28, %s3330_s22  ;;  %v2404_v28 = vld [vmem:[%s3930_s8 + $0x50] sm:$0xff] (!%p2614_p6) }
0x1565   : > { %v3249_v29 = vpop.eup %3248 }
0x1566   : > { %2335 = vrot.lane.b32.xlu1 %v3249_v29, %s3330_s22  ;;  %v2405_v29 = vld [vmem:[%s3930_s8 + $0x58] sm:$0xff] (!%p2614_p6) }
0x15d4   : > { %v2316_v30 = vpop.permute.xlu0 %2315 }
0x15d5   : > { %v2318_v31 = vmul.f32 %v3243_v10, %v2316_v30  ;;  %v2396_v10 = vld [vmem:[%s3930_s8 + $0x10] sm:$0xff] (!%p2614_p6)  ;;  %v3073_v30 = vpack.c.bf16 (!%p2614_p6), %v2405_v29, %v2404_v28 }
0x15d7   : > { %2352 = vrot.lane.b32.xlu0 %v2318_v31, %s3333_s30  ;;  %v2340_v38 = vrot.slane %v2318_v31, 6  ;;  %v2406_v31 = vld [vmem:[%s3930_s8 + $0x60] sm:$0xff] (!%p2614_p6) }
0x15d8   : > { %v2336_v33 = vpop.permute.xlu1 %2335 }
0x15d9   : > { %v2338_v39 = vmul.f32 %v3245_v11, %v2336_v33  ;;  %v2397_v11 = vld [vmem:[%s3930_s8 + $0x18] sm:$0xff] (!%p2614_p6)  ;;  %v2407_v33 = vld [vmem:[%s3930_s8 + $0x68] sm:$0xff] (!%p2614_p6) }
0x15da   : > { %v3061_v12 = vpack.c.bf16 (!%p2614_p6), %v2397_v11, %v2396_v10 }
0x15db   : > { %2347 = vrot.lane.b32.xlu1 %v2338_v39, %s3333_s30  ;;  %2341 = vrot.lane.b32.xlu0 %v2340_v38, %s3333_s30  ;;  %v3076_v38 = vpack.c.bf16 (!%p2614_p6), %v2407_v33, %v2406_v31  ;;  %v2408_v39 = vld [vmem:[%s3930_s8 + $0x70] sm:$0xff] (!%p2614_p6) }
0x15dc   : > { %3062 = vmatpush3.bf16.msra.mxu0 (!%p2614_p6), %v3061_v12  ;;  %v3079_v41 = vpack.c.bf16 (!%p2614_p6), %v2409_v40, %v2408_v39 }
0x15dd   : > { %3063 = vmatprep.subr.bf16.mxu0 (!%p2614_p6), %v3336_v36 }
0x15df   : > { %2358 = vrot.lane.b32.xlu1 %v2312_v21, %s3334_s11  ;;  %2365 = vrot.lane.b32.xlu0 %v2332_v27, %s3334_s11  ;;  %v3067_v21 = vpack.c.bf16 (!%p2614_p6), %v2401_v20, %v2400_v25  ;;  %v3070_v27 = vpack.c.bf16 (!%p2614_p6), %v2403_v23, %v2402_v22 }
0x15e0   : > { %3065 = vmatpush3.bf16.msra.mxu0 (!%p2614_p6), %v3064_v16 }
0x15e1   : > { %3066 = vmatprep.subr.bf16.mxu0 (!%p2614_p6), %v3336_v36 }
0x15e4   : > { %3068 = vmatpush3.bf16.msra.mxu0 (!%p2614_p6), %v3067_v21 }
0x15e5   : > { %3069 = vmatprep.subr.bf16.mxu0 (!%p2614_p6), %v3336_v36 }
0x15e8   : > { %3071 = vmatpush3.bf16.msra.mxu0 (!%p2614_p6), %v3070_v27 }
0x15e9   : > { %3072 = vmatprep.subr.bf16.mxu0 (!%p2614_p6), %v3336_v36 }
0x15ec   : > { %3074 = vmatpush3.bf16.msra.mxu0 (!%p2614_p6), %v3073_v30 }
0x15ed   : > { %3075 = vmatprep.subr.bf16.mxu0 (!%p2614_p6), %v3336_v36 }
0x15f0   : > { %3077 = vmatpush3.bf16.msra.mxu0 (!%p2614_p6), %v3076_v38 }
0x15f1   : > { %3078 = vmatprep.subr.bf16.mxu0 (!%p2614_p6), %v3336_v36 }
0x15f4   : > { %3080 = vmatpush3.bf16.msra.mxu0 (!%p2614_p6), %v3079_v41 }
0x1649   : > { %v2353_v2 = vpop.permute.xlu0 %2352 }
0x164a   : > { %2356 = vst.msk [vmem:[#allocation2 - $0x6] sm:$0xc0] %vm2355_vm4, %v2353_v2 }
0x164d   : > { %v2348_v5 = vpop.permute.xlu1 %2347  ;;  %v2342_v15 = vpop.permute.xlu0 %2341  ;;  %2376 = sbr.rel (%p2614_p6) target bundleno = 6185 (0x1829), region = 72 }
0x164e   : > { %v2350_v7 = vadd.f32 %v2348_v5, %v2134_v37  ;;  %v2351_v8 = vmax.f32 %v2135_v19, %v2348_v5  ;;  %2363 = vst.msk [vmem:[#allocation4] sm:$0x3] %vm2362_vm5, %v2348_v5  ;;  %v3832_v42 = vadd.f32 %v2342_v15, %v2127_v35  ;;  %v2345_v6 = vmax.f32 %v2128_v17, %v2342_v15 }
0x1650   : > { %2371 = vst.msk [vmem:[#allocation8] sm:$0x3] %vm2362_vm5, %v2350_v7  ;;  %2372 = vst.msk [vmem:[#allocation9] sm:$0x3] %vm2362_vm5, %v2351_v8  ;;  %2384 = vrot.lane.b32.xlu0 (!%p2614_p6), %v2351_v8, %s3335_s21 }
0x1651   : > { %2369 = vst.msk [vmem:[#allocation6] sm:$0x3] %vm2362_vm5, %v3832_v42  ;;  %2370 = vst.msk [vmem:[#allocation7] sm:$0x3] %vm2362_vm5, %v2345_v6  ;;  %v2359_v57 = vpop.permute.xlu1 %2358  ;;  %v2366_v58 = vpop.permute.xlu0 %2365 }
0x1652   : > { %2361 = vst.msk [vmem:[#allocation3 - $0x6] sm:$0xc0] %vm2355_vm4, %v2359_v57 }
0x1653   : > { %2368 = vst.msk [vmem:[#allocation5] sm:$0x3] %vm2362_vm5, %v2366_v58 }
0x1654   : > { %2378 = vrot.lane.b32.xlu0 %v2350_v7, %s3335_s21 }
0x16c2   : > { %v2385_v44 = vpop.permute.xlu0 %2384 }
0x16c3   : > { %v2387_v45 = vsel %vm602_vm3, %v2345_v6, %v2385_v44 }
0x16c4   : > { %2389 = vrot.lane.b32.xlu1 %v2387_v45, %s3339_s29 }
0x16c6   : > { %v2379_v46 = vpop.permute.xlu0 %2378 }
0x16c7   : > { %v2381_v47 = vsel %vm602_vm3, %v3832_v42, %v2379_v46 }
0x16c8   : > { %v2382_v48 = vmul.f32 0.0625, %v2381_v47 }
0x1736   : > { %v2390_v49 = vpop.permute.xlu1 %2389 }
0x1737   : > { %v2393_v50 = vsel %vm2392_vm7, %v2382_v48, %v2390_v49 }
0x1738   : > { %2951 = vmatmul.mubr.f32.vlgmr.msra.gmra.mrb[0].mxu0 %v2393_v50 }
0x180b   : > { %v2483_v54 = vpop.f32.mrb[0].mxu0 }
0x180c   : > { %v2484_v55 = vadd.f32 %v2615_v53, %v2483_v54  ;;  %v2952_v56 = vpop.f32.mrb[1].mxu0 }
0x180e   : > { %v2616_v59 = vmul.f32 -1.442695, %v2484_v55 }
0x1810   : > { %3250 = vpow2.f32 %v2616_v59 }
0x181a   : > { %v3251_v13 = vpop.eup %3250 }
0x181b   : > { %v2490_v60 = vadd.f32 1.0, %v3251_v13 }
0x181d   : > { %3252 = vrcp.f32 %v2490_v60 }
0x1827   : > { %v3253_v14 = vpop.eup %3252 }
0x1828   : > { %2494 = vst.msk [vmem:[#allocation13] sm:$0x3] %vm2493_vm8, %v3253_v14 }
0x1829 PF: > { %p3095_p10 = scmp.eq.s32.totalorder %s3402_s14, 1  ;;  %s3340_s12 = smov [#allocation13]  }
0x182a   : > { %s2502_s15 = sshll.u32 %s3340_s12, 4  ;;  %s2503_s15 = int_to_ptr.vmem [resolvable:$true] %s2502_s15 }
0x182b   : > { %s3282_s18 = scalar_lea.vmem %s2503_s15, 32  ;;  %p3289_p0 = scmp.lt.s32.totalorder %s2503_s15, %s2503_s15 }
0x182c   : > { %p3283_p11 = scmp.ne.s32.totalorder %s2503_s15, %s3282_s18  ;;  %p3290_p1 = scmp.lt.s32.totalorder %s3282_s18, %s3282_s18 }
0x182e   : > { %p3284_p12 = pnand %p3283_p11, %p3095_p10  ;;  %p3291_p5 = por %p3290_p1, %p3289_p0 }
0x1830   : > { %p3285_p13 = pneg %p3284_p12 }
0x1832   : > { %p3292_p7 = pnand %p3291_p5, %p3285_p13 }
0x1834   : > { %3295 = shalt.err (!%p3292_p7)
}
0x1835   : > { %s3296_s20 = scalar_lea.hbm %s3932_s10, 32 }
0x1836   : > { %p3297_p9 = scmp.ne.s32.totalorder %s3932_s10, %s3296_s20  ;;  %p3302_p3 = scmp.lt.u32.totalorder %s3296_s20, %s3932_s10 }
0x1838   : > { %p3298_p8 = pnand %p3297_p9, %p3095_p10 }
0x183a   : > { %p3299_p2 = pneg %p3298_p8 }
0x183c   : > { %p3304_p4 = pnand %p3302_p3, %p3299_p2 }
0x183e   : > { %3307 = shalt.err (!%p3304_p4)
}
0x183f   : > { %3086 = dma.vmem_to_hbm [thread:$0]  (%p3095_p10), %s2503_s15, 32, %s3932_s10, [#allocation12]  }
0x1840   : > { %3317 = dma.done.wait (%p3095_p10), [#allocation12], 32  }
0x1841   : > { %3319 = vsyncadd (%p3095_p10), [#allocation12], 4294967264 }
0x1842 PF: > { %s22_s13 = sadd.s32 1, %s3322_s13  }
0x1843   : > { %p19_p6 = scmp.ge.s32.totalorder %s22_s13, 4  }
0x1845   :  { %21 = sbr.rel (!%p19_p6) target bundleno = 2 (0x2), region = 103 }
0x184c   :  { %2515 = vsyncpa [#allocation11], 1 }
0x184d   :  { %2517 = vsyncpa [#allocation11 + $0x1], 1 }
0x184e   :  { %2518 = vsyncpa [#allocation12], 1 }
0x184f   :  { %2520 = vsyncpa [#allocation12 + $0x1], 1 }

</bundles_post_ra>
